<compile_context>
chip_gen: v7x
topology: tpu7x:2x2x1
jax: 0.10.0
libtpu: 0.0.40
codegen_flags: <defaults>
</compile_context>

<pallas_src>
import functools

import jax
import jax.numpy as jnp
from jax import lax
from jax.experimental import pallas as pl
from jax.experimental.pallas import tpu as pltpu


# -----------------------------------------------------------------------------
# helpers
# -----------------------------------------------------------------------------
def _vmem_limit_bytes():
    """~3/4 of physical VMEM: ~96 MiB on v5e/v6e (128 MiB), ~48 MiB on v7x (64 MiB)."""
    try:
        cap = int(pltpu.get_tpu_info().vmem_capacity_bytes)
    except Exception:
        cap = 64 << 20
    return int(min(max((cap * 3) // 4, 32 << 20), 96 << 20))


def _largest_divisor_leq(n, cap):
    cap = max(1, min(n, cap))
    for d in range(cap, 0, -1):
        if n % d == 0:
            return d
    return 1


def _pick_patch_block(num_patches, n_tok, c, dh, heads, vmem_limit):
    """VMEM-budgeted patch block; keeps >=2 grid steps when possible."""
    per_patch = (n_tok * c * (2 + 4 + 16)          # xt(bf16) + f32 acc + dbl-buffered io blocks
                 + 4 * n_tok * dh * 4              # q/k/v/o for one head at a time
                 + n_tok * n_tok * 4 + 1024)       # scores + slack
    cap = max(1, (vmem_limit // 2) // per_patch)
    tb = _largest_divisor_leq(num_patches, min(128, cap))
    if num_patches // tb < 2 and num_patches >= 2:
        tb = _largest_divisor_leq(num_patches, num_patches // 2)
    return tb


def _pick_hw_tile(hw, c, vmem_limit):
    """Largest multiple-of-8 divisor of HW whose streamed tiles fit the VMEM budget."""
    per_row = 8 * c * 4 + 64
    cap = max(8, (vmem_limit // 3) // per_row)
    if hw <= cap or hw % 8 != 0:
        return hw
    cands = [d for d in range(8, hw + 1, 8) if hw % d == 0 and d <= cap]
    return max(cands) if cands else hw


# -----------------------------------------------------------------------------
# Kernel A: batched per-patch multi-head attention
#   x block  : (TB, N, C)          TB patches of N = ph*pw tokens
#   wqkv     : (3*heads, C, dh)    [q_h0..q_hH, k_h0.., v_h0..] leading-axis packed, bf16
#   wo       : (heads, dh, C)      per-head rows of to_out^T, bf16
# -----------------------------------------------------------------------------
def _spa_attn_kernel(x_ref, wqkv_ref, wo_ref, o_ref, *, heads):
    TB, N, C = x_ref.shape
    dh = wo_ref.shape[1]
    T = TB * N

    xt = x_ref[...].reshape(T, C).astype(jnp.bfloat16)   # bf16 MXU operand, cast once
    out_acc = jnp.zeros((T, C), jnp.float32)              # single (T, C) accumulator

    # Unrolled over heads (small, static): leading-axis weight views, no broadcast
    # of x across heads, no (heads, T, C) intermediate before the head-sum.
    for hh in range(heads):
        q = jnp.dot(xt, wqkv_ref[hh], preferred_element_type=jnp.float32)
        k = jnp.dot(xt, wqkv_ref[heads + hh], preferred_element_type=jnp.float32)
        v = jnp.dot(xt, wqkv_ref[2 * heads + hh], preferred_element_type=jnp.float32)
        q = q.reshape(TB, N, dh)
        k = k.reshape(TB, N, dh)
        v = v.reshape(TB, N, dh)

        # scores = Q @ K^T  (norm_factor == 1 in the reference)
        s = jnp.einsum("bqd,bkd->bqk", q.astype(jnp.bfloat16), k.astype(jnp.bfloat16),
                       preferred_element_type=jnp.float32)
        s = s - jnp.max(s, axis=-1, keepdims=True)
        p = jnp.exp(s)
        p = p * pl.reciprocal(jnp.sum(p, axis=-1, keepdims=True), approx=True)
        o = jnp.einsum("bqk,bkd->bqd", p.astype(jnp.bfloat16), v.astype(jnp.bfloat16),
                       preferred_element_type=jnp.float32)

        # per-head output projection accumulated into (T, C)  ==  concat(heads)@to_out
        out_acc = out_acc + jnp.dot(o.reshape(T, dh).astype(jnp.bfloat16), wo_ref[hh],
                                    preferred_element_type=jnp.float32)

    o_ref[...] = out_acc.reshape(TB, N, C).astype(o_ref.dtype)


def spa_attention(xp, wqkv, wo, heads, tb, vmem_limit):
    """xp: (BP, N, C) patch-major tokens; returns (BP, N, C)."""
    BP, N, C = xp.shape
    dh = wo.shape[1]
    assert BP % tb == 0
    return pl.pallas_call(
        functools.partial(_spa_attn_kernel, heads=heads),
        out_shape=jax.ShapeDtypeStruct((BP, N, C), xp.dtype),
        grid=(BP // tb,),
        in_specs=[
            pl.BlockSpec((tb, N, C), lambda i: (i, 0, 0)),
            pl.BlockSpec((3 * heads, C, dh), lambda i: (0, 0, 0)),
            pl.BlockSpec((heads, dh, C), lambda i: (0, 0, 0)),
        ],
        out_specs=pl.BlockSpec((tb, N, C), lambda i: (i, 0, 0)),
        compiler_params=pltpu.CompilerParams(
            dimension_semantics=("parallel",),
            vmem_limit_bytes=vmem_limit),
    )(xp, wqkv, wo)


# -----------------------------------------------------------------------------
# Kernel B1: streamed FMAM-stand-in context builder.
#   Grid (b: parallel, hw_tile: arbitrary).  Online spatial softmax over the
#   streamed HW tiles (running max / sum / ctx accumulators in VMEM scratch);
#   ctx = X^T @ softmax_spatial(X @ Wk) of shape (C, C), written on the last tile.
# -----------------------------------------------------------------------------
def _freq_ctx_kernel(x_ref, wk_ref, ctx_ref, m_sc, l_sc, ctx_sc):
    t = pl.program_id(1)

    @pl.when(t == 0)
    def _():
        m_sc[...] = jnp.full(m_sc.shape, -jnp.inf, jnp.float32)
        l_sc[...] = jnp.zeros(l_sc.shape, jnp.float32)
        ctx_sc[...] = jnp.zeros(ctx_sc.shape, jnp.float32)

    x = x_ref[0]                                              # (THW, C) f32
    xb = x.astype(jnp.bfloat16)
    kf = jnp.dot(xb, wk_ref[...], preferred_element_type=jnp.float32)   # (THW, C)

    m_new = jnp.maximum(m_sc[...], jnp.max(kf, axis=0, keepdims=True))  # (1, C)
    scale = jnp.exp(m_sc[...] - m_new)                                  # (1, C)
    e = jnp.exp(kf - m_new)                                             # (THW, C)
    l_sc[...] = scale * l_sc[...] + jnp.sum(e, axis=0, keepdims=True)
    ctx_sc[...] = scale * ctx_sc[...] + lax.dot_general(
        xb, e.astype(jnp.bfloat16), (((0,), (0,)), ((), ())),
        preferred_element_type=jnp.float32)                             # (C, C)
    m_sc[...] = m_new

    @pl.when(t == pl.num_programs(1) - 1)
    def _():
        ctx_ref[0] = (ctx_sc[...] *
                      pl.reciprocal(l_sc[...], approx=True)).astype(ctx_ref.dtype)


def freq_context(x_pm, wk_conv, thw, vmem_limit):
    """x_pm: (b, HW, C) tokens; wk_conv: (C, C) bf16; returns ctx (b, C, C)."""
    b, HW, C = x_pm.shape
    assert HW % thw == 0
    return pl.pallas_call(
        _freq_ctx_kernel,
        out_shape=jax.ShapeDtypeStruct((b, C, C), jnp.float32),
        grid=(b, HW // thw),
        in_specs=[
            pl.BlockSpec((1, thw, C), lambda bi, ti: (bi, ti, 0)),
            pl.BlockSpec((C, C), lambda bi, ti: (0, 0)),
        ],
        out_specs=pl.BlockSpec((1, C, C), lambda bi, ti: (bi, 0, 0)),
        scratch_shapes=[
            pltpu.VMEM((1, C), jnp.float32),    # running max
            pltpu.VMEM((1, C), jnp.float32),    # running sum
            pltpu.VMEM((C, C), jnp.float32),    # running ctx
        ],
        compiler_params=pltpu.CompilerParams(
            dimension_semantics=("parallel", "arbitrary"),
            vmem_limit_bytes=vmem_limit),
    )(x_pm, wk_conv)


# -----------------------------------------------------------------------------
# Kernel B2: streamed apply + combine.  Per-token channel softmax of the queries
#   1x1 conv, freq = A @ ctx, and the depthwise (2,1,1) Conv3d combine of the
#   spatial & frequency branches.  All per-token -> every HW tile independent.
# -----------------------------------------------------------------------------
def _freq_apply_kernel(x_ref, spa_ref, ctx_ref, wq_ref, bq_ref, wdw_ref, o_ref):
    x = x_ref[0]          # (THW, C)
    spa = spa_ref[0]      # (THW, C)

    qf = jnp.dot(x.astype(jnp.bfloat16), wq_ref[...],
                 preferred_element_type=jnp.float32) + bq_ref[...]
    # queries = softmax over the channel axis (torch: softmax(dim=1) on [b,c,hw]).
    qf = qf - jnp.max(qf, axis=-1, keepdims=True)
    eq = jnp.exp(qf)
    a = eq * pl.reciprocal(jnp.sum(eq, axis=-1, keepdims=True), approx=True)

    freq = jnp.dot(a.astype(jnp.bfloat16), ctx_ref[0].astype(jnp.bfloat16),
                   preferred_element_type=jnp.float32)        # (THW, C)

    # depthwise Conv3d (2,1,1), no bias; stack order [spa, freq]:
    w0 = wdw_ref[0, :]
    w1 = wdw_ref[1, :]
    o_ref[0] = (spa * w0[None, :] + freq * w1[None, :]).astype(o_ref.dtype)


def freq_apply_combine(x_pm, spa_pm, ctx, wq_conv, bq_conv, wdw, thw, vmem_limit):
    b, HW, C = x_pm.shape
    assert HW % thw == 0
    return pl.pallas_call(
        _freq_apply_kernel,
        out_shape=jax.ShapeDtypeStruct((b, HW, C), x_pm.dtype),
        grid=(b, HW // thw),
        in_specs=[
            pl.BlockSpec((1, thw, C), lambda bi, ti: (bi, ti, 0)),
            pl.BlockSpec((1, thw, C), lambda bi, ti: (bi, ti, 0)),
            pl.BlockSpec((1, C, C), lambda bi, ti: (bi, 0, 0)),
            pl.BlockSpec((C, C), lambda bi, ti: (0, 0)),
            pl.BlockSpec((1, C), lambda bi, ti: (0, 0)),
            pl.BlockSpec((2, C), lambda bi, ti: (0, 0)),
        ],
        out_specs=pl.BlockSpec((1, thw, C), lambda bi, ti: (bi, ti, 0)),
        compiler_params=pltpu.CompilerParams(
            dimension_semantics=("parallel", "parallel"),
            vmem_limit_bytes=vmem_limit),
    )(x_pm, spa_pm, ctx, wq_conv, bq_conv, wdw)


# -----------------------------------------------------------------------------
# Forward wrapper: exactly two XLA transposes (NCHW <-> patch-major tokens);
# all compute is inside the three pallas_calls.
# -----------------------------------------------------------------------------
def fps_attn_forward(x, wqkv, wo, wq_conv, bq_conv, wk_conv, wdw, *,
                     patch_size, heads, patch_block=None, hw_tile=None):
    """x: NCHW (b, c, h, w); returns NCHW (b, c, h, w)."""
    b, c, h, w = x.shape
    ph, pw = patch_size
    nh, nw = h // ph, w // pw
    N = ph * pw
    HW = h * w
    dh = wo.shape[1]

    vmem_limit = _vmem_limit_bytes()

    # NCHW -> '(b nh nw) (hh ww) c' patch-major tokens (single XLA transpose).
    xp = (x.reshape(b, c, nh, ph, nw, pw)
           .transpose(0, 2, 4, 3, 5, 1)
           .reshape(b * nh * nw, N, c))

    tb = patch_block or _pick_patch_block(b * nh * nw, N, c, dh, heads, vmem_limit)
    spa_p = spa_attention(xp, wqkv, wo, heads, tb, vmem_limit)       # (BP, N, c)

    # Per-image patch-major token views (metadata reshapes only).
    x_pm = xp.reshape(b, nh * nw * N, c)
    spa_pm = spa_p.reshape(b, nh * nw * N, c)

    thw = hw_tile or _pick_hw_tile(HW, c, vmem_limit)
    ctx = freq_context(x_pm, wk_conv, thw, vmem_limit)               # (b, c, c)
    out_pm = freq_apply_combine(x_pm, spa_pm, ctx, wq_conv, bq_conv, wdw,
                                thw, vmem_limit)                     # (b, HW, c)

    # patch-major tokens -> NCHW (single XLA transpose).
    out = (out_pm.reshape(b, nh, nw, ph, pw, c)
                 .transpose(0, 5, 1, 3, 2, 4)
                 .reshape(b, c, h, w))
    return out


# -----------------------------------------------------------------------------
if __name__ == "__main__":
    # Small, module-consistent shapes: channels=16, heads=4, patch=(4,4), 8x8 image.
    b, c, h, w = 2, 16, 8, 8
    heads = 4
    patch_size = (4, 4)
    inner = 3 * c
    dh = inner // heads

    key = jax.random.PRNGKey(0)
    ks = jax.random.split(key, 9)
    x = jax.random.normal(ks[0], (b, c, h, w), jnp.float32)

    # Deterministic parameter init (shapes follow the module's __init__),
    # stored as transposed linear / 1x1-conv weights (in_features, out_features).
    s_in = 1.0 / jnp.sqrt(jnp.float32(c))
    s_inner = 1.0 / jnp.sqrt(jnp.float32(inner))
    wq_t = jax.random.normal(ks[1], (c, inner), jnp.float32) * s_in      # to_q.weight^T
    wk_t = jax.random.normal(ks[2], (c, inner), jnp.float32) * s_in      # to_k.weight^T
    wv_t = jax.random.normal(ks[3], (c, inner), jnp.float32) * s_in      # to_v.weight^T
    wo_t = jax.random.normal(ks[4], (inner, c), jnp.float32) * s_inner   # to_out.weight^T
    wq_conv_t = jax.random.normal(ks[5], (c, c), jnp.float32) * s_in     # queries 1x1 conv^T
    bq_conv = jax.random.normal(ks[6], (1, c), jnp.float32) * 0.1        # queries conv bias
    wk_conv_t = jax.random.normal(ks[7], (c, c), jnp.float32) * s_in     # FMAM stand-in key conv^T
    wdw = jax.random.normal(ks[8], (2, c), jnp.float32) * 0.5            # conv_dw (C,1,2,1,1) -> (2,C)

    # Host-side weight repacking (free).  Per-head column blocks of the transposed
    # linear weights, packed on the LEADING axis (no lane-axis slicing in-kernel),
    # shipped as bf16 MXU operands.
    def _per_head(wt):   # (c, inner) -> (heads, c, dh), columns head-major as in .view(B,N,H,dh)
        return jnp.transpose(wt.reshape(c, heads, dh), (1, 0, 2))

    wqkv = jnp.concatenate([_per_head(wq_t), _per_head(wk_t), _per_head(wv_t)],
                           axis=0).astype(jnp.bfloat16)                 # (3*heads, c, dh)
    wo = wo_t.reshape(heads, dh, c).astype(jnp.bfloat16)                # (heads, dh, c)
    wq_conv = wq_conv_t.astype(jnp.bfloat16)                            # (c, c)
    wk_conv = wk_conv_t.astype(jnp.bfloat16)                            # (c, c)

    # hw_tile=32 forces >1 HW tile so the streamed ctx accumulation path is exercised.
    fwd = jax.jit(functools.partial(fps_attn_forward,
                                    patch_size=patch_size, heads=heads, hw_tile=32))
    out = fwd(x, wqkv, wo, wq_conv, bq_conv, wk_conv, wdw)
    jax.block_until_ready(out)
    assert out.shape == (b, c, h, w) and out.dtype == jnp.float32
    print("KERNEL_OK")
</pallas_src>

<mosaic_0001>
module attributes {stable_mosaic.version = 11 : i64} {
  func.func @_spa_attn_kernel(%arg0: i32, %arg1: memref<4x16x16xf32, #tpu.memory_space<vmem>>, %arg2: memref<12x16x12xbf16, #tpu.memory_space<vmem>>, %arg3: memref<4x12x16xbf16, #tpu.memory_space<vmem>>, %arg4: memref<4x16x16xf32, #tpu.memory_space<vmem>>) attributes {dimension_semantics = [#tpu.dimension_semantics<parallel>], iteration_bounds = array<i64: 2>, scalar_prefetch = 0 : i64, scratch_operands = 0 : i64, tpu.core_type = #tpu.core_type<tc>, window_params = [{transform_indices = @transform_0, window_bounds = array<i64: 4, 16, 16>}, {pipeline_mode = #tpu.pipeline_mode<synchronous>, transform_indices = @transform_1, window_bounds = array<i64: 12, 16, 12>}, {pipeline_mode = #tpu.pipeline_mode<synchronous>, transform_indices = @transform_2, window_bounds = array<i64: 4, 12, 16>}, {transform_indices = @transform_3, window_bounds = array<i64: 4, 16, 16>}]} {
    %c0 = arith.constant 0 : index
    %c0_0 = arith.constant 0 : index
    %c0_1 = arith.constant 0 : index
    %0 = vector.load %arg1[%c0, %c0_0, %c0_1] : memref<4x16x16xf32, #tpu.memory_space<vmem>>, vector<4x16x16xf32>
    %1 = vector.shape_cast %0 : vector<4x16x16xf32> to vector<64x16xf32>
    %2 = arith.truncf %1 : vector<64x16xf32> to vector<64x16xbf16>
    %cst = arith.constant 0.000000e+00 : f32
    %3 = vector.broadcast %cst : f32 to vector<64x16xf32>
    %c0_2 = arith.constant 0 : index
    %c0_3 = arith.constant 0 : index
    %c0_4 = arith.constant 0 : index
    %4 = vector.load %arg2[%c0_2, %c0_3, %c0_4] : memref<12x16x12xbf16, #tpu.memory_space<vmem>>, vector<1x16x12xbf16>
    %5 = vector.shape_cast %4 : vector<1x16x12xbf16> to vector<16x12xbf16>
    %cst_5 = arith.constant dense<0.000000e+00> : vector<64x12xf32>
    %6 = tpu.matmul %2, %5, %cst_5 {dimension_numbers = #tpu.dot_dimension_numbers<[1], [0], [0], [1], [0, 0, 1, 1], [], []>} : vector<64x16xbf16>, vector<16x12xbf16>, vector<64x12xf32> -> vector<64x12xf32>
    %c4 = arith.constant 4 : index
    %c0_6 = arith.constant 0 : index
    %c0_7 = arith.constant 0 : index
    %7 = vector.load %arg2[%c4, %c0_6, %c0_7] : memref<12x16x12xbf16, #tpu.memory_space<vmem>>, vector<1x16x12xbf16>
    %8 = vector.shape_cast %7 : vector<1x16x12xbf16> to vector<16x12xbf16>
    %cst_8 = arith.constant dense<0.000000e+00> : vector<64x12xf32>
    %9 = tpu.matmul %2, %8, %cst_8 {dimension_numbers = #tpu.dot_dimension_numbers<[1], [0], [0], [1], [0, 0, 1, 1], [], []>} : vector<64x16xbf16>, vector<16x12xbf16>, vector<64x12xf32> -> vector<64x12xf32>
    %c8 = arith.constant 8 : index
    %c0_9 = arith.constant 0 : index
    %c0_10 = arith.constant 0 : index
    %10 = vector.load %arg2[%c8, %c0_9, %c0_10] : memref<12x16x12xbf16, #tpu.memory_space<vmem>>, vector<1x16x12xbf16>
    %11 = vector.shape_cast %10 : vector<1x16x12xbf16> to vector<16x12xbf16>
    %cst_11 = arith.constant dense<0.000000e+00> : vector<64x12xf32>
    %12 = tpu.matmul %2, %11, %cst_11 {dimension_numbers = #tpu.dot_dimension_numbers<[1], [0], [0], [1], [0, 0, 1, 1], [], []>} : vector<64x16xbf16>, vector<16x12xbf16>, vector<64x12xf32> -> vector<64x12xf32>
    %13 = vector.shape_cast %6 : vector<64x12xf32> to vector<4x16x12xf32>
    %14 = vector.shape_cast %9 : vector<64x12xf32> to vector<4x16x12xf32>
    %15 = vector.shape_cast %12 : vector<64x12xf32> to vector<4x16x12xf32>
    %16 = arith.truncf %13 : vector<4x16x12xf32> to vector<4x16x12xbf16>
    %17 = arith.truncf %14 : vector<4x16x12xf32> to vector<4x16x12xbf16>
    "tpu.trace_start"() <{level = 10 : i32, message = "bqd,bkd->bqk"}> : () -> ()
    %cst_12 = arith.constant dense<0.000000e+00> : vector<4x16x16xf32>
    %18 = tpu.matmul %16, %17, %cst_12 {dimension_numbers = #tpu.dot_dimension_numbers<[2], [2], [1], [1], [0, 0, 0, 1, 1, 1], [0], [0]>} : vector<4x16x12xbf16>, vector<4x16x12xbf16>, vector<4x16x16xf32> -> vector<4x16x16xf32>
    "tpu.trace_stop"() : () -> ()
    %cst_13 = arith.constant dense<0xFF800000> : vector<4x16xf32>
    %19 = vector.multi_reduction <maximumf>, %18, %cst_13 [2] : vector<4x16x16xf32> to vector<4x16xf32>
    %20 = vector.shape_cast %19 : vector<4x16xf32> to vector<4x16x1xf32>
    %21 = vector.broadcast %20 : vector<4x16x1xf32> to vector<4x16x16xf32>
    %22 = arith.subf %18, %21 : vector<4x16x16xf32>
    %23 = math.exp %22 : vector<4x16x16xf32>
    %cst_14 = arith.constant dense<0.000000e+00> : vector<4x16xf32>
    %24 = vector.multi_reduction <add>, %23, %cst_14 [2] : vector<4x16x16xf32> to vector<4x16xf32>
    %25 = vector.shape_cast %24 : vector<4x16xf32> to vector<4x16x1xf32>
    %26 = tpu.reciprocal %25 {approx = true} : vector<4x16x1xf32> -> vector<4x16x1xf32>
    %27 = vector.broadcast %26 : vector<4x16x1xf32> to vector<4x16x16xf32>
    %28 = arith.mulf %23, %27 : vector<4x16x16xf32>
    %29 = arith.truncf %28 : vector<4x16x16xf32> to vector<4x16x16xbf16>
    %30 = arith.truncf %15 : vector<4x16x12xf32> to vector<4x16x12xbf16>
    "tpu.trace_start"() <{level = 10 : i32, message = "bqk,bkd->bqd"}> : () -> ()
    %cst_15 = arith.constant dense<0.000000e+00> : vector<4x16x12xf32>
    %31 = tpu.matmul %29, %30, %cst_15 {dimension_numbers = #tpu.dot_dimension_numbers<[2], [1], [1], [2], [0, 0, 0, 1, 1, 2], [0], [0]>} : vector<4x16x16xbf16>, vector<4x16x12xbf16>, vector<4x16x12xf32> -> vector<4x16x12xf32>
    "tpu.trace_stop"() : () -> ()
    %32 = vector.shape_cast %31 : vector<4x16x12xf32> to vector<64x12xf32>
    %33 = arith.truncf %32 : vector<64x12xf32> to vector<64x12xbf16>
    %c0_16 = arith.constant 0 : index
    %c0_17 = arith.constant 0 : index
    %c0_18 = arith.constant 0 : index
    %34 = vector.load %arg3[%c0_16, %c0_17, %c0_18] : memref<4x12x16xbf16, #tpu.memory_space<vmem>>, vector<1x12x16xbf16>
    %35 = vector.shape_cast %34 : vector<1x12x16xbf16> to vector<12x16xbf16>
    %cst_19 = arith.constant dense<0.000000e+00> : vector<64x16xf32>
    %36 = tpu.matmul %33, %35, %cst_19 {dimension_numbers = #tpu.dot_dimension_numbers<[1], [0], [0], [1], [0, 0, 1, 1], [], []>} : vector<64x12xbf16>, vector<12x16xbf16>, vector<64x16xf32> -> vector<64x16xf32>
    %37 = arith.addf %3, %36 : vector<64x16xf32>
    %c1 = arith.constant 1 : index
    %c0_20 = arith.constant 0 : index
    %c0_21 = arith.constant 0 : index
    %38 = vector.load %arg2[%c1, %c0_20, %c0_21] : memref<12x16x12xbf16, #tpu.memory_space<vmem>>, vector<1x16x12xbf16>
    %39 = vector.shape_cast %38 : vector<1x16x12xbf16> to vector<16x12xbf16>
    %cst_22 = arith.constant dense<0.000000e+00> : vector<64x12xf32>
    %40 = tpu.matmul %2, %39, %cst_22 {dimension_numbers = #tpu.dot_dimension_numbers<[1], [0], [0], [1], [0, 0, 1, 1], [], []>} : vector<64x16xbf16>, vector<16x12xbf16>, vector<64x12xf32> -> vector<64x12xf32>
    %c5 = arith.constant 5 : index
    %c0_23 = arith.constant 0 : index
    %c0_24 = arith.constant 0 : index
    %41 = vector.load %arg2[%c5, %c0_23, %c0_24] : memref<12x16x12xbf16, #tpu.memory_space<vmem>>, vector<1x16x12xbf16>
    %42 = vector.shape_cast %41 : vector<1x16x12xbf16> to vector<16x12xbf16>
    %cst_25 = arith.constant dense<0.000000e+00> : vector<64x12xf32>
    %43 = tpu.matmul %2, %42, %cst_25 {dimension_numbers = #tpu.dot_dimension_numbers<[1], [0], [0], [1], [0, 0, 1, 1], [], []>} : vector<64x16xbf16>, vector<16x12xbf16>, vector<64x12xf32> -> vector<64x12xf32>
    %c9 = arith.constant 9 : index
    %c0_26 = arith.constant 0 : index
    %c0_27 = arith.constant 0 : index
    %44 = vector.load %arg2[%c9, %c0_26, %c0_27] : memref<12x16x12xbf16, #tpu.memory_space<vmem>>, vector<1x16x12xbf16>
    %45 = vector.shape_cast %44 : vector<1x16x12xbf16> to vector<16x12xbf16>
    %cst_28 = arith.constant dense<0.000000e+00> : vector<64x12xf32>
    %46 = tpu.matmul %2, %45, %cst_28 {dimension_numbers = #tpu.dot_dimension_numbers<[1], [0], [0], [1], [0, 0, 1, 1], [], []>} : vector<64x16xbf16>, vector<16x12xbf16>, vector<64x12xf32> -> vector<64x12xf32>
    %47 = vector.shape_cast %40 : vector<64x12xf32> to vector<4x16x12xf32>
    %48 = vector.shape_cast %43 : vector<64x12xf32> to vector<4x16x12xf32>
    %49 = vector.shape_cast %46 : vector<64x12xf32> to vector<4x16x12xf32>
    %50 = arith.truncf %47 : vector<4x16x12xf32> to vector<4x16x12xbf16>
    %51 = arith.truncf %48 : vector<4x16x12xf32> to vector<4x16x12xbf16>
    "tpu.trace_start"() <{level = 10 : i32, message = "bqd,bkd->bqk"}> : () -> ()
    %cst_29 = arith.constant dense<0.000000e+00> : vector<4x16x16xf32>
    %52 = tpu.matmul %50, %51, %cst_29 {dimension_numbers = #tpu.dot_dimension_numbers<[2], [2], [1], [1], [0, 0, 0, 1, 1, 1], [0], [0]>} : vector<4x16x12xbf16>, vector<4x16x12xbf16>, vector<4x16x16xf32> -> vector<4x16x16xf32>
    "tpu.trace_stop"() : () -> ()
    %cst_30 = arith.constant dense<0xFF800000> : vector<4x16xf32>
    %53 = vector.multi_reduction <maximumf>, %52, %cst_30 [2] : vector<4x16x16xf32> to vector<4x16xf32>
    %54 = vector.shape_cast %53 : vector<4x16xf32> to vector<4x16x1xf32>
    %55 = vector.broadcast %54 : vector<4x16x1xf32> to vector<4x16x16xf32>
    %56 = arith.subf %52, %55 : vector<4x16x16xf32>
    %57 = math.exp %56 : vector<4x16x16xf32>
    %cst_31 = arith.constant dense<0.000000e+00> : vector<4x16xf32>
    %58 = vector.multi_reduction <add>, %57, %cst_31 [2] : vector<4x16x16xf32> to vector<4x16xf32>
    %59 = vector.shape_cast %58 : vector<4x16xf32> to vector<4x16x1xf32>
    %60 = tpu.reciprocal %59 {approx = true} : vector<4x16x1xf32> -> vector<4x16x1xf32>
    %61 = vector.broadcast %60 : vector<4x16x1xf32> to vector<4x16x16xf32>
    %62 = arith.mulf %57, %61 : vector<4x16x16xf32>
    %63 = arith.truncf %62 : vector<4x16x16xf32> to vector<4x16x16xbf16>
    %64 = arith.truncf %49 : vector<4x16x12xf32> to vector<4x16x12xbf16>
    "tpu.trace_start"() <{level = 10 : i32, message = "bqk,bkd->bqd"}> : () -> ()
    %cst_32 = arith.constant dense<0.000000e+00> : vector<4x16x12xf32>
    %65 = tpu.matmul %63, %64, %cst_32 {dimension_numbers = #tpu.dot_dimension_numbers<[2], [1], [1], [2], [0, 0, 0, 1, 1, 2], [0], [0]>} : vector<4x16x16xbf16>, vector<4x16x12xbf16>, vector<4x16x12xf32> -> vector<4x16x12xf32>
    "tpu.trace_stop"() : () -> ()
    %66 = vector.shape_cast %65 : vector<4x16x12xf32> to vector<64x12xf32>
    %67 = arith.truncf %66 : vector<64x12xf32> to vector<64x12xbf16>
    %c1_33 = arith.constant 1 : index
    %c0_34 = arith.constant 0 : index
    %c0_35 = arith.constant 0 : index
    %68 = vector.load %arg3[%c1_33, %c0_34, %c0_35] : memref<4x12x16xbf16, #tpu.memory_space<vmem>>, vector<1x12x16xbf16>
    %69 = vector.shape_cast %68 : vector<1x12x16xbf16> to vector<12x16xbf16>
    %cst_36 = arith.constant dense<0.000000e+00> : vector<64x16xf32>
    %70 = tpu.matmul %67, %69, %cst_36 {dimension_numbers = #tpu.dot_dimension_numbers<[1], [0], [0], [1], [0, 0, 1, 1], [], []>} : vector<64x12xbf16>, vector<12x16xbf16>, vector<64x16xf32> -> vector<64x16xf32>
    %71 = arith.addf %37, %70 : vector<64x16xf32>
    %c2 = arith.constant 2 : index
    %c0_37 = arith.constant 0 : index
    %c0_38 = arith.constant 0 : index
    %72 = vector.load %arg2[%c2, %c0_37, %c0_38] : memref<12x16x12xbf16, #tpu.memory_space<vmem>>, vector<1x16x12xbf16>
    %73 = vector.shape_cast %72 : vector<1x16x12xbf16> to vector<16x12xbf16>
    %cst_39 = arith.constant dense<0.000000e+00> : vector<64x12xf32>
    %74 = tpu.matmul %2, %73, %cst_39 {dimension_numbers = #tpu.dot_dimension_numbers<[1], [0], [0], [1], [0, 0, 1, 1], [], []>} : vector<64x16xbf16>, vector<16x12xbf16>, vector<64x12xf32> -> vector<64x12xf32>
    %c6 = arith.constant 6 : index
    %c0_40 = arith.constant 0 : index
    %c0_41 = arith.constant 0 : index
    %75 = vector.load %arg2[%c6, %c0_40, %c0_41] : memref<12x16x12xbf16, #tpu.memory_space<vmem>>, vector<1x16x12xbf16>
    %76 = vector.shape_cast %75 : vector<1x16x12xbf16> to vector<16x12xbf16>
    %cst_42 = arith.constant dense<0.000000e+00> : vector<64x12xf32>
    %77 = tpu.matmul %2, %76, %cst_42 {dimension_numbers = #tpu.dot_dimension_numbers<[1], [0], [0], [1], [0, 0, 1, 1], [], []>} : vector<64x16xbf16>, vector<16x12xbf16>, vector<64x12xf32> -> vector<64x12xf32>
    %c10 = arith.constant 10 : index
    %c0_43 = arith.constant 0 : index
    %c0_44 = arith.constant 0 : index
    %78 = vector.load %arg2[%c10, %c0_43, %c0_44] : memref<12x16x12xbf16, #tpu.memory_space<vmem>>, vector<1x16x12xbf16>
    %79 = vector.shape_cast %78 : vector<1x16x12xbf16> to vector<16x12xbf16>
    %cst_45 = arith.constant dense<0.000000e+00> : vector<64x12xf32>
    %80 = tpu.matmul %2, %79, %cst_45 {dimension_numbers = #tpu.dot_dimension_numbers<[1], [0], [0], [1], [0, 0, 1, 1], [], []>} : vector<64x16xbf16>, vector<16x12xbf16>, vector<64x12xf32> -> vector<64x12xf32>
    %81 = vector.shape_cast %74 : vector<64x12xf32> to vector<4x16x12xf32>
    %82 = vector.shape_cast %77 : vector<64x12xf32> to vector<4x16x12xf32>
    %83 = vector.shape_cast %80 : vector<64x12xf32> to vector<4x16x12xf32>
    %84 = arith.truncf %81 : vector<4x16x12xf32> to vector<4x16x12xbf16>
    %85 = arith.truncf %82 : vector<4x16x12xf32> to vector<4x16x12xbf16>
    "tpu.trace_start"() <{level = 10 : i32, message = "bqd,bkd->bqk"}> : () -> ()
    %cst_46 = arith.constant dense<0.000000e+00> : vector<4x16x16xf32>
    %86 = tpu.matmul %84, %85, %cst_46 {dimension_numbers = #tpu.dot_dimension_numbers<[2], [2], [1], [1], [0, 0, 0, 1, 1, 1], [0], [0]>} : vector<4x16x12xbf16>, vector<4x16x12xbf16>, vector<4x16x16xf32> -> vector<4x16x16xf32>
    "tpu.trace_stop"() : () -> ()
    %cst_47 = arith.constant dense<0xFF800000> : vector<4x16xf32>
    %87 = vector.multi_reduction <maximumf>, %86, %cst_47 [2] : vector<4x16x16xf32> to vector<4x16xf32>
    %88 = vector.shape_cast %87 : vector<4x16xf32> to vector<4x16x1xf32>
    %89 = vector.broadcast %88 : vector<4x16x1xf32> to vector<4x16x16xf32>
    %90 = arith.subf %86, %89 : vector<4x16x16xf32>
    %91 = math.exp %90 : vector<4x16x16xf32>
    %cst_48 = arith.constant dense<0.000000e+00> : vector<4x16xf32>
    %92 = vector.multi_reduction <add>, %91, %cst_48 [2] : vector<4x16x16xf32> to vector<4x16xf32>
    %93 = vector.shape_cast %92 : vector<4x16xf32> to vector<4x16x1xf32>
    %94 = tpu.reciprocal %93 {approx = true} : vector<4x16x1xf32> -> vector<4x16x1xf32>
    %95 = vector.broadcast %94 : vector<4x16x1xf32> to vector<4x16x16xf32>
    %96 = arith.mulf %91, %95 : vector<4x16x16xf32>
    %97 = arith.truncf %96 : vector<4x16x16xf32> to vector<4x16x16xbf16>
    %98 = arith.truncf %83 : vector<4x16x12xf32> to vector<4x16x12xbf16>
    "tpu.trace_start"() <{level = 10 : i32, message = "bqk,bkd->bqd"}> : () -> ()
    %cst_49 = arith.constant dense<0.000000e+00> : vector<4x16x12xf32>
    %99 = tpu.matmul %97, %98, %cst_49 {dimension_numbers = #tpu.dot_dimension_numbers<[2], [1], [1], [2], [0, 0, 0, 1, 1, 2], [0], [0]>} : vector<4x16x16xbf16>, vector<4x16x12xbf16>, vector<4x16x12xf32> -> vector<4x16x12xf32>
    "tpu.trace_stop"() : () -> ()
    %100 = vector.shape_cast %99 : vector<4x16x12xf32> to vector<64x12xf32>
    %101 = arith.truncf %100 : vector<64x12xf32> to vector<64x12xbf16>
    %c2_50 = arith.constant 2 : index
    %c0_51 = arith.constant 0 : index
    %c0_52 = arith.constant 0 : index
    %102 = vector.load %arg3[%c2_50, %c0_51, %c0_52] : memref<4x12x16xbf16, #tpu.memory_space<vmem>>, vector<1x12x16xbf16>
    %103 = vector.shape_cast %102 : vector<1x12x16xbf16> to vector<12x16xbf16>
    %cst_53 = arith.constant dense<0.000000e+00> : vector<64x16xf32>
    %104 = tpu.matmul %101, %103, %cst_53 {dimension_numbers = #tpu.dot_dimension_numbers<[1], [0], [0], [1], [0, 0, 1, 1], [], []>} : vector<64x12xbf16>, vector<12x16xbf16>, vector<64x16xf32> -> vector<64x16xf32>
    %105 = arith.addf %71, %104 : vector<64x16xf32>
    %c3 = arith.constant 3 : index
    %c0_54 = arith.constant 0 : index
    %c0_55 = arith.constant 0 : index
    %106 = vector.load %arg2[%c3, %c0_54, %c0_55] : memref<12x16x12xbf16, #tpu.memory_space<vmem>>, vector<1x16x12xbf16>
    %107 = vector.shape_cast %106 : vector<1x16x12xbf16> to vector<16x12xbf16>
    %cst_56 = arith.constant dense<0.000000e+00> : vector<64x12xf32>
    %108 = tpu.matmul %2, %107, %cst_56 {dimension_numbers = #tpu.dot_dimension_numbers<[1], [0], [0], [1], [0, 0, 1, 1], [], []>} : vector<64x16xbf16>, vector<16x12xbf16>, vector<64x12xf32> -> vector<64x12xf32>
    %c7 = arith.constant 7 : index
    %c0_57 = arith.constant 0 : index
    %c0_58 = arith.constant 0 : index
    %109 = vector.load %arg2[%c7, %c0_57, %c0_58] : memref<12x16x12xbf16, #tpu.memory_space<vmem>>, vector<1x16x12xbf16>
    %110 = vector.shape_cast %109 : vector<1x16x12xbf16> to vector<16x12xbf16>
    %cst_59 = arith.constant dense<0.000000e+00> : vector<64x12xf32>
    %111 = tpu.matmul %2, %110, %cst_59 {dimension_numbers = #tpu.dot_dimension_numbers<[1], [0], [0], [1], [0, 0, 1, 1], [], []>} : vector<64x16xbf16>, vector<16x12xbf16>, vector<64x12xf32> -> vector<64x12xf32>
    %c11 = arith.constant 11 : index
    %c0_60 = arith.constant 0 : index
    %c0_61 = arith.constant 0 : index
    %112 = vector.load %arg2[%c11, %c0_60, %c0_61] : memref<12x16x12xbf16, #tpu.memory_space<vmem>>, vector<1x16x12xbf16>
    %113 = vector.shape_cast %112 : vector<1x16x12xbf16> to vector<16x12xbf16>
    %cst_62 = arith.constant dense<0.000000e+00> : vector<64x12xf32>
    %114 = tpu.matmul %2, %113, %cst_62 {dimension_numbers = #tpu.dot_dimension_numbers<[1], [0], [0], [1], [0, 0, 1, 1], [], []>} : vector<64x16xbf16>, vector<16x12xbf16>, vector<64x12xf32> -> vector<64x12xf32>
    %115 = vector.shape_cast %108 : vector<64x12xf32> to vector<4x16x12xf32>
    %116 = vector.shape_cast %111 : vector<64x12xf32> to vector<4x16x12xf32>
    %117 = vector.shape_cast %114 : vector<64x12xf32> to vector<4x16x12xf32>
    %118 = arith.truncf %115 : vector<4x16x12xf32> to vector<4x16x12xbf16>
    %119 = arith.truncf %116 : vector<4x16x12xf32> to vector<4x16x12xbf16>
    "tpu.trace_start"() <{level = 10 : i32, message = "bqd,bkd->bqk"}> : () -> ()
    %cst_63 = arith.constant dense<0.000000e+00> : vector<4x16x16xf32>
    %120 = tpu.matmul %118, %119, %cst_63 {dimension_numbers = #tpu.dot_dimension_numbers<[2], [2], [1], [1], [0, 0, 0, 1, 1, 1], [0], [0]>} : vector<4x16x12xbf16>, vector<4x16x12xbf16>, vector<4x16x16xf32> -> vector<4x16x16xf32>
    "tpu.trace_stop"() : () -> ()
    %cst_64 = arith.constant dense<0xFF800000> : vector<4x16xf32>
    %121 = vector.multi_reduction <maximumf>, %120, %cst_64 [2] : vector<4x16x16xf32> to vector<4x16xf32>
    %122 = vector.shape_cast %121 : vector<4x16xf32> to vector<4x16x1xf32>
    %123 = vector.broadcast %122 : vector<4x16x1xf32> to vector<4x16x16xf32>
    %124 = arith.subf %120, %123 : vector<4x16x16xf32>
    %125 = math.exp %124 : vector<4x16x16xf32>
    %cst_65 = arith.constant dense<0.000000e+00> : vector<4x16xf32>
    %126 = vector.multi_reduction <add>, %125, %cst_65 [2] : vector<4x16x16xf32> to vector<4x16xf32>
    %127 = vector.shape_cast %126 : vector<4x16xf32> to vector<4x16x1xf32>
    %128 = tpu.reciprocal %127 {approx = true} : vector<4x16x1xf32> -> vector<4x16x1xf32>
    %129 = vector.broadcast %128 : vector<4x16x1xf32> to vector<4x16x16xf32>
    %130 = arith.mulf %125, %129 : vector<4x16x16xf32>
    %131 = arith.truncf %130 : vector<4x16x16xf32> to vector<4x16x16xbf16>
    %132 = arith.truncf %117 : vector<4x16x12xf32> to vector<4x16x12xbf16>
    "tpu.trace_start"() <{level = 10 : i32, message = "bqk,bkd->bqd"}> : () -> ()
    %cst_66 = arith.constant dense<0.000000e+00> : vector<4x16x12xf32>
    %133 = tpu.matmul %131, %132, %cst_66 {dimension_numbers = #tpu.dot_dimension_numbers<[2], [1], [1], [2], [0, 0, 0, 1, 1, 2], [0], [0]>} : vector<4x16x16xbf16>, vector<4x16x12xbf16>, vector<4x16x12xf32> -> vector<4x16x12xf32>
    "tpu.trace_stop"() : () -> ()
    %134 = vector.shape_cast %133 : vector<4x16x12xf32> to vector<64x12xf32>
    %135 = arith.truncf %134 : vector<64x12xf32> to vector<64x12xbf16>
    %c3_67 = arith.constant 3 : index
    %c0_68 = arith.constant 0 : index
    %c0_69 = arith.constant 0 : index
    %136 = vector.load %arg3[%c3_67, %c0_68, %c0_69] : memref<4x12x16xbf16, #tpu.memory_space<vmem>>, vector<1x12x16xbf16>
    %137 = vector.shape_cast %136 : vector<1x12x16xbf16> to vector<12x16xbf16>
    %cst_70 = arith.constant dense<0.000000e+00> : vector<64x16xf32>
    %138 = tpu.matmul %135, %137, %cst_70 {dimension_numbers = #tpu.dot_dimension_numbers<[1], [0], [0], [1], [0, 0, 1, 1], [], []>} : vector<64x12xbf16>, vector<12x16xbf16>, vector<64x16xf32> -> vector<64x16xf32>
    %139 = arith.addf %105, %138 : vector<64x16xf32>
    %140 = vector.shape_cast %139 : vector<64x16xf32> to vector<4x16x16xf32>
    %c0_71 = arith.constant 0 : index
    %c0_72 = arith.constant 0 : index
    %c0_73 = arith.constant 0 : index
    %141 = vector.load %arg4[%c0_71, %c0_72, %c0_73] : memref<4x16x16xf32, #tpu.memory_space<vmem>>, vector<4x16x16xf32>
    tpu.vector_store %arg4[%c0_71, %c0_72, %c0_73], %140 {strides = array<i32>} : memref<4x16x16xf32, #tpu.memory_space<vmem>>, vector<4x16x16xf32>,
    return
  }
  func.func @transform_0(%arg0: i32) -> (i32, i32, i32) {
    %c0_i32 = arith.constant 0 : i32
    %c0_i32_0 = arith.constant 0 : i32
    %c0_i32_1 = arith.constant 0 : i32
    return %arg0, %c0_i32, %c0_i32_0 : i32, i32, i32
  }
  func.func @transform_1(%arg0: i32) -> (i32, i32, i32) {
    %c0_i32 = arith.constant 0 : i32
    %c0_i32_0 = arith.constant 0 : i32
    %c0_i32_1 = arith.constant 0 : i32
    %c0_i32_2 = arith.constant 0 : i32
    return %c0_i32, %c0_i32_0, %c0_i32_1 : i32, i32, i32
  }
  func.func @transform_2(%arg0: i32) -> (i32, i32, i32) {
    %c0_i32 = arith.constant 0 : i32
    %c0_i32_0 = arith.constant 0 : i32
    %c0_i32_1 = arith.constant 0 : i32
    %c0_i32_2 = arith.constant 0 : i32
    return %c0_i32, %c0_i32_0, %c0_i32_1 : i32, i32, i32
  }
  func.func @transform_3(%arg0: i32) -> (i32, i32, i32) {
    %c0_i32 = arith.constant 0 : i32
    %c0_i32_0 = arith.constant 0 : i32
    %c0_i32_1 = arith.constant 0 : i32
    return %arg0, %c0_i32, %c0_i32_0 : i32, i32, i32
  }
}

module attributes {stable_mosaic.version = 11 : i64} {
  func.func @_freq_ctx_kernel(%arg0: i32, %arg1: i32, %arg2: memref<1x32x16xf32, #tpu.memory_space<vmem>>, %arg3: memref<16x16xbf16, #tpu.memory_space<vmem>>, %arg4: memref<1x16x16xf32, #tpu.memory_space<vmem>>, %arg5: memref<1x16xf32, #tpu.memory_space<vmem>>, %arg6: memref<1x16xf32, #tpu.memory_space<vmem>>, %arg7: memref<16x16xf32, #tpu.memory_space<vmem>>) attributes {dimension_semantics = [#tpu.dimension_semantics<parallel>, #tpu.dimension_semantics<arbitrary>], iteration_bounds = array<i64: 2, 2>, scalar_prefetch = 0 : i64, scratch_operands = 3 : i64, tpu.core_type = #tpu.core_type<tc>, window_params = [{transform_indices = @transform_0, window_bounds = array<i64: 1, 32, 16>}, {pipeline_mode = #tpu.pipeline_mode<synchronous>, transform_indices = @transform_1, window_bounds = array<i64: 16, 16>}, {transform_indices = @transform_2, window_bounds = array<i64: 1, 16, 16>}]} {
    %c0_i32 = arith.constant 0 : i32
    %0 = arith.cmpi eq, %arg1, %c0_i32 : i32
    %1 = arith.extui %0 : i1 to i32
    %c0_i32_0 = arith.constant 0 : i32
    %2 = arith.cmpi ne, %1, %c0_i32_0 : i32
    scf.if %2 {
      %cst_23 = arith.constant 0xFF800000 : f32
      %35 = vector.broadcast %cst_23 : f32 to vector<1x16xf32>
      %c0_24 = arith.constant 0 : index
      %c0_25 = arith.constant 0 : index
      %36 = vector.load %arg5[%c0_24, %c0_25] : memref<1x16xf32, #tpu.memory_space<vmem>>, vector<1x16xf32>
      tpu.vector_store %arg5[%c0_24, %c0_25], %35 {strides = array<i32>} : memref<1x16xf32, #tpu.memory_space<vmem>>, vector<1x16xf32>,
      %cst_26 = arith.constant 0.000000e+00 : f32
      %37 = vector.broadcast %cst_26 : f32 to vector<1x16xf32>
      %c0_27 = arith.constant 0 : index
      %c0_28 = arith.constant 0 : index
      %38 = vector.load %arg6[%c0_27, %c0_28] : memref<1x16xf32, #tpu.memory_space<vmem>>, vector<1x16xf32>
      tpu.vector_store %arg6[%c0_27, %c0_28], %37 {strides = array<i32>} : memref<1x16xf32, #tpu.memory_space<vmem>>, vector<1x16xf32>,
      %cst_29 = arith.constant 0.000000e+00 : f32
      %39 = vector.broadcast %cst_29 : f32 to vector<16x16xf32>
      %c0_30 = arith.constant 0 : index
      %c0_31 = arith.constant 0 : index
      %40 = vector.load %arg7[%c0_30, %c0_31] : memref<16x16xf32, #tpu.memory_space<vmem>>, vector<16x16xf32>
      tpu.vector_store %arg7[%c0_30, %c0_31], %39 {strides = array<i32>} : memref<16x16xf32, #tpu.memory_space<vmem>>, vector<16x16xf32>,
    } else {
    }
    %c0 = arith.constant 0 : index
    %c0_1 = arith.constant 0 : index
    %c0_2 = arith.constant 0 : index
    %3 = vector.load %arg2[%c0, %c0_1, %c0_2] : memref<1x32x16xf32, #tpu.memory_space<vmem>>, vector<1x32x16xf32>
    %4 = vector.shape_cast %3 : vector<1x32x16xf32> to vector<32x16xf32>
    %5 = arith.truncf %4 : vector<32x16xf32> to vector<32x16xbf16>
    %c0_3 = arith.constant 0 : index
    %c0_4 = arith.constant 0 : index
    %6 = vector.load %arg3[%c0_3, %c0_4] : memref<16x16xbf16, #tpu.memory_space<vmem>>, vector<16x16xbf16>
    %cst = arith.constant dense<0.000000e+00> : vector<32x16xf32>
    %7 = tpu.matmul %5, %6, %cst {dimension_numbers = #tpu.dot_dimension_numbers<[1], [0], [0], [1], [0, 0, 1, 1], [], []>} : vector<32x16xbf16>, vector<16x16xbf16>, vector<32x16xf32> -> vector<32x16xf32>
    %c0_5 = arith.constant 0 : index
    %c0_6 = arith.constant 0 : index
    %8 = vector.load %arg5[%c0_5, %c0_6] : memref<1x16xf32, #tpu.memory_space<vmem>>, vector<1x16xf32>
    %cst_7 = arith.constant dense<0xFF800000> : vector<16xf32>
    %9 = vector.multi_reduction <maximumf>, %7, %cst_7 [0] : vector<32x16xf32> to vector<16xf32>
    %10 = vector.shape_cast %9 : vector<16xf32> to vector<1x16xf32>
    %11 = arith.maximumf %8, %10 : vector<1x16xf32>
    %c0_8 = arith.constant 0 : index
    %c0_9 = arith.constant 0 : index
    %12 = vector.load %arg5[%c0_8, %c0_9] : memref<1x16xf32, #tpu.memory_space<vmem>>, vector<1x16xf32>
    %13 = arith.subf %12, %11 : vector<1x16xf32>
    %14 = math.exp %13 : vector<1x16xf32>
    %15 = vector.broadcast %11 : vector<1x16xf32> to vector<32x16xf32>
    %16 = arith.subf %7, %15 : vector<32x16xf32>
    %17 = math.exp %16 : vector<32x16xf32>
    %c0_10 = arith.constant 0 : index
    %c0_11 = arith.constant 0 : index
    %18 = vector.load %arg6[%c0_10, %c0_11] : memref<1x16xf32, #tpu.memory_space<vmem>>, vector<1x16xf32>
    %19 = arith.mulf %14, %18 : vector<1x16xf32>
    %cst_12 = arith.constant dense<0.000000e+00> : vector<16xf32>
    %20 = vector.multi_reduction <add>, %17, %cst_12 [0] : vector<32x16xf32> to vector<16xf32>
    %21 = vector.shape_cast %20 : vector<16xf32> to vector<1x16xf32>
    %22 = arith.addf %19, %21 : vector<1x16xf32>
    %c0_13 = arith.constant 0 : index
    %c0_14 = arith.constant 0 : index
    %23 = vector.load %arg6[%c0_13, %c0_14] : memref<1x16xf32, #tpu.memory_space<vmem>>, vector<1x16xf32>
    tpu.vector_store %arg6[%c0_13, %c0_14], %22 {strides = array<i32>} : memref<1x16xf32, #tpu.memory_space<vmem>>, vector<1x16xf32>,
    %c0_15 = arith.constant 0 : index
    %c0_16 = arith.constant 0 : index
    %24 = vector.load %arg7[%c0_15, %c0_16] : memref<16x16xf32, #tpu.memory_space<vmem>>, vector<16x16xf32>
    %25 = vector.broadcast %14 : vector<1x16xf32> to vector<16x16xf32>
    %26 = arith.mulf %25, %24 : vector<16x16xf32>
    %27 = arith.truncf %17 : vector<32x16xf32> to vector<32x16xbf16>
    %cst_17 = arith.constant dense<0.000000e+00> : vector<16x16xf32>
    %28 = tpu.matmul %5, %27, %cst_17 {dimension_numbers = #tpu.dot_dimension_numbers<[0], [0], [1], [1], [0, 1, 1, 1], [], []>} : vector<32x16xbf16>, vector<32x16xbf16>, vector<16x16xf32> -> vector<16x16xf32>
    %29 = arith.addf %26, %28 : vector<16x16xf32>
    %c0_18 = arith.constant 0 : index
    %c0_19 = arith.constant 0 : index
    %30 = vector.load %arg7[%c0_18, %c0_19] : memref<16x16xf32, #tpu.memory_space<vmem>>, vector<16x16xf32>
    tpu.vector_store %arg7[%c0_18, %c0_19], %29 {strides = array<i32>} : memref<16x16xf32, #tpu.memory_space<vmem>>, vector<16x16xf32>,
    %c0_20 = arith.constant 0 : index
    %c0_21 = arith.constant 0 : index
    %31 = vector.load %arg5[%c0_20, %c0_21] : memref<1x16xf32, #tpu.memory_space<vmem>>, vector<1x16xf32>
    tpu.vector_store %arg5[%c0_20, %c0_21], %11 {strides = array<i32>} : memref<1x16xf32, #tpu.memory_space<vmem>>, vector<1x16xf32>,
    %c1_i32 = arith.constant 1 : i32
    %32 = arith.cmpi eq, %arg1, %c1_i32 : i32
    %33 = arith.extui %32 : i1 to i32
    %c0_i32_22 = arith.constant 0 : i32
    %34 = arith.cmpi ne, %33, %c0_i32_22 : i32
    scf.if %34 {
      %c0_23 = arith.constant 0 : index
      %c0_24 = arith.constant 0 : index
      %35 = vector.load %arg7[%c0_23, %c0_24] : memref<16x16xf32, #tpu.memory_space<vmem>>, vector<16x16xf32>
      %c0_25 = arith.constant 0 : index
      %c0_26 = arith.constant 0 : index
      %36 = vector.load %arg6[%c0_25, %c0_26] : memref<1x16xf32, #tpu.memory_space<vmem>>, vector<1x16xf32>
      %37 = tpu.reciprocal %36 {approx = true} : vector<1x16xf32> -> vector<1x16xf32>
      %38 = vector.broadcast %37 : vector<1x16xf32> to vector<16x16xf32>
      %39 = arith.mulf %35, %38 : vector<16x16xf32>
      %c0_27 = arith.constant 0 : index
      %c0_28 = arith.constant 0 : index
      %c0_29 = arith.constant 0 : index
      %40 = vector.load %arg4[%c0_27, %c0_28, %c0_29] : memref<1x16x16xf32, #tpu.memory_space<vmem>>, vector<1x16x16xf32>
      %41 = vector.shape_cast %40 : vector<1x16x16xf32> to vector<16x16xf32>
      %42 = vector.shape_cast %39 : vector<16x16xf32> to vector<1x16x16xf32>
      tpu.vector_store %arg4[%c0_27, %c0_28, %c0_29], %42 {strides = array<i32>} : memref<1x16x16xf32, #tpu.memory_space<vmem>>, vector<1x16x16xf32>,
    } else {
    }
    return
  }
  func.func @transform_0(%arg0: i32, %arg1: i32) -> (i32, i32, i32) {
    %c0_i32 = arith.constant 0 : i32
    %c0_i32_0 = arith.constant 0 : i32
    return %arg0, %arg1, %c0_i32 : i32, i32, i32
  }
  func.func @transform_1(%arg0: i32, %arg1: i32) -> (i32, i32) {
    %c0_i32 = arith.constant 0 : i32
    %c0_i32_0 = arith.constant 0 : i32
    %c0_i32_1 = arith.constant 0 : i32
    return %c0_i32, %c0_i32_0 : i32, i32
  }
  func.func @transform_2(%arg0: i32, %arg1: i32) -> (i32, i32, i32) {
    %c0_i32 = arith.constant 0 : i32
    %c0_i32_0 = arith.constant 0 : i32
    %c0_i32_1 = arith.constant 0 : i32
    return %arg0, %c0_i32, %c0_i32_0 : i32, i32, i32
  }
}

module attributes {stable_mosaic.version = 11 : i64} {
  func.func @_freq_apply_kernel(%arg0: i32, %arg1: i32, %arg2: memref<1x32x16xf32, #tpu.memory_space<vmem>>, %arg3: memref<1x32x16xf32, #tpu.memory_space<vmem>>, %arg4: memref<1x16x16xf32, #tpu.memory_space<vmem>>, %arg5: memref<16x16xbf16, #tpu.memory_space<vmem>>, %arg6: memref<1x16xf32, #tpu.memory_space<vmem>>, %arg7: memref<2x16xf32, #tpu.memory_space<vmem>>, %arg8: memref<1x32x16xf32, #tpu.memory_space<vmem>>) attributes {dimension_semantics = [#tpu.dimension_semantics<parallel>, #tpu.dimension_semantics<parallel>], iteration_bounds = array<i64: 2, 2>, scalar_prefetch = 0 : i64, scratch_operands = 0 : i64, tpu.core_type = #tpu.core_type<tc>, window_params = [{transform_indices = @transform_0, window_bounds = array<i64: 1, 32, 16>}, {transform_indices = @transform_1, window_bounds = array<i64: 1, 32, 16>}, {transform_indices = @transform_2, window_bounds = array<i64: 1, 16, 16>}, {pipeline_mode = #tpu.pipeline_mode<synchronous>, transform_indices = @transform_3, window_bounds = array<i64: 16, 16>}, {pipeline_mode = #tpu.pipeline_mode<synchronous>, transform_indices = @transform_4, window_bounds = array<i64: 1, 16>}, {pipeline_mode = #tpu.pipeline_mode<synchronous>, transform_indices = @transform_5, window_bounds = array<i64: 2, 16>}, {transform_indices = @transform_6, window_bounds = array<i64: 1, 32, 16>}]} {
    %c0 = arith.constant 0 : index
    %c0_0 = arith.constant 0 : index
    %c0_1 = arith.constant 0 : index
    %0 = vector.load %arg2[%c0, %c0_0, %c0_1] : memref<1x32x16xf32, #tpu.memory_space<vmem>>, vector<1x32x16xf32>
    %1 = vector.shape_cast %0 : vector<1x32x16xf32> to vector<32x16xf32>
    %c0_2 = arith.constant 0 : index
    %c0_3 = arith.constant 0 : index
    %c0_4 = arith.constant 0 : index
    %2 = vector.load %arg3[%c0_2, %c0_3, %c0_4] : memref<1x32x16xf32, #tpu.memory_space<vmem>>, vector<1x32x16xf32>
    %3 = vector.shape_cast %2 : vector<1x32x16xf32> to vector<32x16xf32>
    %4 = arith.truncf %1 : vector<32x16xf32> to vector<32x16xbf16>
    %c0_5 = arith.constant 0 : index
    %c0_6 = arith.constant 0 : index
    %5 = vector.load %arg5[%c0_5, %c0_6] : memref<16x16xbf16, #tpu.memory_space<vmem>>, vector<16x16xbf16>
    %cst = arith.constant dense<0.000000e+00> : vector<32x16xf32>
    %6 = tpu.matmul %4, %5, %cst {dimension_numbers = #tpu.dot_dimension_numbers<[1], [0], [0], [1], [0, 0, 1, 1], [], []>} : vector<32x16xbf16>, vector<16x16xbf16>, vector<32x16xf32> -> vector<32x16xf32>
    %c0_7 = arith.constant 0 : index
    %c0_8 = arith.constant 0 : index
    %7 = vector.load %arg6[%c0_7, %c0_8] : memref<1x16xf32, #tpu.memory_space<vmem>>, vector<1x16xf32>
    %8 = vector.broadcast %7 : vector<1x16xf32> to vector<32x16xf32>
    %9 = arith.addf %6, %8 : vector<32x16xf32>
    %cst_9 = arith.constant dense<0xFF800000> : vector<32xf32>
    %10 = vector.multi_reduction <maximumf>, %9, %cst_9 [1] : vector<32x16xf32> to vector<32xf32>
    %11 = vector.shape_cast %10 : vector<32xf32> to vector<32x1xf32>
    %12 = vector.broadcast %11 : vector<32x1xf32> to vector<32x16xf32>
    %13 = arith.subf %9, %12 : vector<32x16xf32>
    %14 = math.exp %13 : vector<32x16xf32>
    %cst_10 = arith.constant dense<0.000000e+00> : vector<32xf32>
    %15 = vector.multi_reduction <add>, %14, %cst_10 [1] : vector<32x16xf32> to vector<32xf32>
    %16 = vector.shape_cast %15 : vector<32xf32> to vector<32x1xf32>
    %17 = tpu.reciprocal %16 {approx = true} : vector<32x1xf32> -> vector<32x1xf32>
    %18 = vector.broadcast %17 : vector<32x1xf32> to vector<32x16xf32>
    %19 = arith.mulf %14, %18 : vector<32x16xf32>
    %20 = arith.truncf %19 : vector<32x16xf32> to vector<32x16xbf16>
    %c0_11 = arith.constant 0 : index
    %c0_12 = arith.constant 0 : index
    %c0_13 = arith.constant 0 : index
    %21 = vector.load %arg4[%c0_11, %c0_12, %c0_13] : memref<1x16x16xf32, #tpu.memory_space<vmem>>, vector<1x16x16xf32>
    %22 = vector.shape_cast %21 : vector<1x16x16xf32> to vector<16x16xf32>
    %23 = arith.truncf %22 : vector<16x16xf32> to vector<16x16xbf16>
    %cst_14 = arith.constant dense<0.000000e+00> : vector<32x16xf32>
    %24 = tpu.matmul %20, %23, %cst_14 {dimension_numbers = #tpu.dot_dimension_numbers<[1], [0], [0], [1], [0, 0, 1, 1], [], []>} : vector<32x16xbf16>, vector<16x16xbf16>, vector<32x16xf32> -> vector<32x16xf32>
    %c0_15 = arith.constant 0 : index
    %c0_16 = arith.constant 0 : index
    %25 = vector.load %arg7[%c0_15, %c0_16] : memref<2x16xf32, #tpu.memory_space<vmem>>, vector<1x16xf32>
    %26 = vector.shape_cast %25 : vector<1x16xf32> to vector<16xf32>
    %c1 = arith.constant 1 : index
    %c0_17 = arith.constant 0 : index
    %27 = vector.load %arg7[%c1, %c0_17] : memref<2x16xf32, #tpu.memory_space<vmem>>, vector<1x16xf32>
    %28 = vector.shape_cast %27 : vector<1x16xf32> to vector<16xf32>
    %29 = vector.shape_cast %26 : vector<16xf32> to vector<1x16xf32>
    %30 = vector.broadcast %29 : vector<1x16xf32> to vector<32x16xf32>
    %31 = arith.mulf %3, %30 : vector<32x16xf32>
    %32 = vector.shape_cast %28 : vector<16xf32> to vector<1x16xf32>
    %33 = vector.broadcast %32 : vector<1x16xf32> to vector<32x16xf32>
    %34 = arith.mulf %24, %33 : vector<32x16xf32>
    %35 = arith.addf %31, %34 : vector<32x16xf32>
    %c0_18 = arith.constant 0 : index
    %c0_19 = arith.constant 0 : index
    %c0_20 = arith.constant 0 : index
    %36 = vector.load %arg8[%c0_18, %c0_19, %c0_20] : memref<1x32x16xf32, #tpu.memory_space<vmem>>, vector<1x32x16xf32>
    %37 = vector.shape_cast %36 : vector<1x32x16xf32> to vector<32x16xf32>
    %38 = vector.shape_cast %35 : vector<32x16xf32> to vector<1x32x16xf32>
    tpu.vector_store %arg8[%c0_18, %c0_19, %c0_20], %38 {strides = array<i32>} : memref<1x32x16xf32, #tpu.memory_space<vmem>>, vector<1x32x16xf32>,
    return
  }
  func.func @transform_0(%arg0: i32, %arg1: i32) -> (i32, i32, i32) {
    %c0_i32 = arith.constant 0 : i32
    %c0_i32_0 = arith.constant 0 : i32
    return %arg0, %arg1, %c0_i32 : i32, i32, i32
  }
  func.func @transform_1(%arg0: i32, %arg1: i32) -> (i32, i32, i32) {
    %c0_i32 = arith.constant 0 : i32
    %c0_i32_0 = arith.constant 0 : i32
    return %arg0, %arg1, %c0_i32 : i32, i32, i32
  }
  func.func @transform_2(%arg0: i32, %arg1: i32) -> (i32, i32, i32) {
    %c0_i32 = arith.constant 0 : i32
    %c0_i32_0 = arith.constant 0 : i32
    %c0_i32_1 = arith.constant 0 : i32
    return %arg0, %c0_i32, %c0_i32_0 : i32, i32, i32
  }
  func.func @transform_3(%arg0: i32, %arg1: i32) -> (i32, i32) {
    %c0_i32 = arith.constant 0 : i32
    %c0_i32_0 = arith.constant 0 : i32
    %c0_i32_1 = arith.constant 0 : i32
    return %c0_i32, %c0_i32_0 : i32, i32
  }
  func.func @transform_4(%arg0: i32, %arg1: i32) -> (i32, i32) {
    %c0_i32 = arith.constant 0 : i32
    %c0_i32_0 = arith.constant 0 : i32
    %c0_i32_1 = arith.constant 0 : i32
    return %c0_i32, %c0_i32_0 : i32, i32
  }
  func.func @transform_5(%arg0: i32, %arg1: i32) -> (i32, i32) {
    %c0_i32 = arith.constant 0 : i32
    %c0_i32_0 = arith.constant 0 : i32
    %c0_i32_1 = arith.constant 0 : i32
    return %c0_i32, %c0_i32_0 : i32, i32
  }
  func.func @transform_6(%arg0: i32, %arg1: i32) -> (i32, i32, i32) {
    %c0_i32 = arith.constant 0 : i32
    %c0_i32_0 = arith.constant 0 : i32
    return %arg0, %arg1, %c0_i32 : i32, i32, i32
  }
}

</mosaic_0001>

<bundles_post_ra>
// kernel: fps_attn_forward.4
= control target key start
LH: loop header
LB: loop body
LE: loop exit
PB: predicated region body
PF: predicated region fallthrough
CT: control target
= control target key end

     0   :  { %s631_s9 = smov 0   ;;  %s633_s10 = smov 0   ;;  %s715_s0 = inlined_call_operand.vmem [shape: f32[2,64,16], index: 0, kind: input, shape index: {}]   ;;  %s716_s1 = inlined_call_operand.vmem [shape: bf16[16,16], index: 1, kind: input, shape index: {}]   ;;  %s717_s2 = inlined_call_operand.vmem [shape: f32[2,16,16], index: 2, kind: output, shape index: {}]  }
   0x1   :  { %s635_s11 = smov 0   ;;  %s637_s12 = smov 0  }
   0x2   :  { %s639_s13 = smov 0  }
   0x3 LB: > { %s21_s14 = sadd.s32 1, %s602_s11  ;;  %s24_s15 = sadd.s32 1, %s606_s12  ;;  %s610_s13 = sphi %s639_s13, %s12_s13   ;;  %s606_s12 = sphi %s637_s12, %s721_s12   ;;  %s602_s11 = sphi %s635_s11, %s720_s11   ;;  %s598_s10 = sphi %s633_s10, %s719_s10   ;;  %s594_s9 = sphi %s631_s9, %s718_s9  }
   0x4   : > { %p22_p0 = scmp.ge.s32.totalorder %s21_s14, 2  ;;  %p479_p1 = scmp.ge.s32.totalorder %s610_s13, 1 }
   0x5   : > { %p131_p2 = scmp.lt.s32.totalorder %s610_s13, 5 }
   0x6   : > { %s723_s14 = smov (%p22_p0, %s21_s14), 0  ;;  %s725_s15 = smov (!%p22_p0, %s24_s15), %s606_s12 }
   0x7   : > { %p132_p3 = pnand %p479_p1, %p131_p2  ;;  %p26_p4 = scmp.ge.s32.totalorder %s725_s15, 2 }
   0x8   : > { %s480_s16 = sshll.u32 (!%p132_p3), %s594_s9, 2  ;;  %p158_p5 = scmp.lt.s32.totalorder (!%p132_p3), %s598_s10, 1 }
   0x9   : > { %s727_s15 = smov (%p26_p4, %s725_s15), 0  ;;  %135 = sbr.rel (%p132_p3) target bundleno = 519 (0x207), region = 28 }
   0xa   : > { %p160_p6 = scmp.lt.s32.totalorder (!%p132_p3), %s480_s16, 7  ;;  %p485_p7 = scmp.ne.s32.totalorder (!%p132_p3), %s594_s9, 0 }
  0x10   : > { %s729_s10 = smov (!%p158_p5, %s598_s10), 1  ;;  %s731_s16 = smov (!%p160_p6, %s480_s16), 7 }
  0x11   : > { %s481_s17 = sshll.u32 %s729_s10, 3  ;;  %s493_s18 = sshll.u32 %s729_s10, 4  ;;  %vm177_vm0 = vcmask (!%p485_p7), 122880   ;;  %vm180_vm1 = vcmask (!%p485_p7), 130048   ;;  %v612_v0 = vmov (!%p485_p7), -inf   ;;  %v613_v1 = vmov (!%p485_p7), 0.0  }
  0x12   : > { %s163_s19 = sadd.s32 %s481_s17, %s731_s16  ;;  %s667_s22 = scalar_lea.vmem %s717_s2, %s493_s18  ;;  %178 = vst.msk [vmem:[#allocation2] sm:$0x1] (!%p485_p7), %vm177_vm0, %v612_v0  ;;  %179 = vst.msk [vmem:[#allocation3] sm:$0x1] (!%p485_p7), %vm177_vm0, %v613_v1 }
  0x13   : > { %s482_s23 = sshll.u32 %s163_s19, 3  ;;  %176 = sbr.rel (%p485_p7) target bundleno = 26 (0x1a), region = 32  ;;  %181 = vst.msk [vmem:[#allocation4] sm:$0xff] (!%p485_p7), %vm180_vm1, %v613_v1  ;;  %182 = vst.msk [vmem:[#allocation4 + $0x8] sm:$0xff] (!%p485_p7), %vm180_vm1, %v613_v1 }
  0x14   : > { %s165_s26 = scalar_lea.vmem %s715_s0, %s482_s23 }
  0x1a PF: > { %v559_v2 = vld [vmem:[%s716_s1] sm:$0xff]   ;;  %v184_v4 = vld [vmem:[%s165_s26 + $0x8] sm:$0xff]  ;;  %vm197_vm2 = vcmask 130048   ;;  %v185_v5 = vld [vmem:[%s165_s26 + $0x10] sm:$0xff]  ;;  %v614_v9 = vmov 0.0   ;;  %vm615_vm3 = vmmov 0   ;;  %v272_v23 = vlaneseq }
  0x1b   : > { %v183_v3 = vld [vmem:[%s165_s26] sm:$0xff]  ;;  %500 = vmatprep.subr.bf16.mxu0 %v559_v2  ;;  %v186_v7 = vld [vmem:[%s165_s26 + $0x18] sm:$0xff]  ;;  %506 = vmatprep.subr.bf16.mxu1 %v614_v9  ;;  %vm305_vm4 = vcmask 122880   ;;  %vm335_vm5 = vcmask 261120   ;;  %p490_p8 = scmp.ne.s32.totalorder %s594_s9, 1 }
  0x1c   : > { %v187_v6 = vpack.c.bf16 %v184_v4, %v183_v3  ;;  %501 = vmatpush3.bf16.msra.mxu0 %v559_v2  ;;  %v188_v8 = vpack.c.bf16 %v186_v7, %v185_v5  ;;  %510 = vmatprep.mubr.msk.bf16.mxu1 %vm615_vm3, %v614_v9  ;;  %v273_v26 = vshrl.u32 %v272_v23, 7  ;;  %v253_v28 = vld [vmem:[#allocation2] sm:$0x1]  ;;  %v289_v63 = vld [vmem:[#allocation3] sm:$0x1]  ;;  %v307_v4 = vld [vmem:[#allocation4] sm:$0xff] }
  0x1d   : > { %v308_v5 = vld [vmem:[#allocation4 + $0x8] sm:$0xff] }
  0x1e   : > { %502 = vmatprep.mubr.msk.bf16.mxu0 %vm197_vm2, %v187_v6  ;;  %319 = vxpose.xlu0.c.b16.start [1/2] (short) (narrow) %v187_v6, 16  ;;  %v682_v30 = vsub.s32 0, %v273_v26 }
  0x1f   : > { %503 = vmatmul.mubr.msk.bf16.vlgmr.msra.gmra.mrb[0].mxu0 %vm197_vm2, %v188_v8 }
  0x22   : > { %320 = vxpose.xlu0.c.b16.end [2/2] (short) (narrow) %v188_v8, 16 }
  0x84   : > { %v327_v58 = vpop.trf.xlu0 }
  0xf2   : > { %v504_v10 = vpop.f32.mrb[0].mxu0 }
  0xf3   : > { %v238_v11 = vpop.f32.mrb[1].mxu0  ;;  %v256_v13 = vsel %vm197_vm2, %v504_v10, -inf }
  0xf4   : > { %v505_v12 = vpop.f32.mrb[2].mxu0  ;;  %v254_v16 = vsel %vm197_vm2, %v238_v11, -inf }
  0xf5   : > { %v257_v14 = vsel %vm197_vm2, %v505_v12, -inf  ;;  %v241_v15 = vpop.f32.mrb[3].mxu0 }
  0xf6   : > { %v259_v17 = vmax.f32 %v256_v13, %v257_v14  ;;  %v255_v18 = vsel %vm197_vm2, %v241_v15, -inf }
  0xf7   : > { %v258_v19 = vmax.f32 %v254_v16, %v255_v18 }
  0xf9   : > { %v260_v20 = vmax.f32 %v258_v19, %v259_v17 }
  0xfb   : > { %v261_v21 = vrot.slane %v260_v20, 4 }
  0xfd   : > { %v262_v22 = vmax.f32 %v260_v20, %v261_v21 }
  0xff   : > { %v263_v24 = vrot.slane %v262_v22, 2 }
 0x101   : > { %v264_v25 = vmax.f32 %v262_v22, %v263_v24 }
 0x103   : > { %v265_v27 = vrot.slane %v264_v25, 1 }
 0x105   : > { %v266_v29 = vmax.f32 %v264_v25, %v265_v27 }
 0x107   : > { %v267_v31 = vmax.f32 %v253_v28, %v266_v29 }
 0x109   : > { %v268_v32 = vsub.f32 %v253_v28, %v267_v31  ;;  %v275_v33 = vrot.slane %v267_v31, %v682_v30  ;;  %384 = vst.msk [vmem:[#allocation2] sm:$0x1] %vm305_vm4, %v267_v31 }
 0x10b   : > { %v278_v34 = vsub.f32 %v241_v15, %v275_v33  ;;  %v277_v35 = vsub.f32 %v238_v11, %v275_v33  ;;  %v279_v36 = vsub.f32 %v504_v10, %v275_v33  ;;  %v280_v37 = vsub.f32 %v505_v12, %v275_v33 }
 0x10c   : > { %v269_v38 = vmul.f32 1.442695, %v268_v32 }
 0x10d   : > { %v283_v39 = vmul.f32 1.442695, %v278_v34  ;;  %v281_v40 = vmul.f32 1.442695, %v277_v35  ;;  %v285_v41 = vmul.f32 1.442695, %v279_v36 }
 0x10e   : > { %v287_v42 = vmul.f32 1.442695, %v280_v37  ;;  %560 = vpow2.f32 %v269_v38 }
 0x10f   : > { %562 = vpow2.f32 %v283_v39 }
 0x110   : > { %564 = vpow2.f32 %v281_v40 }
 0x111   : > { %566 = vpow2.f32 %v285_v41 }
 0x112   : > { %568 = vpow2.f32 %v287_v42 }
 0x118   : > { %v561_v43 = vpop.eup %560 }
 0x119   : > { %v563_v44 = vpop.eup %562  ;;  %v313_v45 = vrot.slane %v561_v43, %v682_v30  ;;  %v290_v2 = vmul.f32 %v561_v43, %v289_v63 }
 0x11a   : > { %v565_v46 = vpop.eup %564  ;;  %v292_v47 = vsel %vm197_vm2, %v563_v44, 0.0 }
 0x11b   : > { %v567_v48 = vpop.eup %566  ;;  %v291_v49 = vsel %vm197_vm2, %v565_v46, 0.0  ;;  %v317_v50 = vpack.c.bf16 %v563_v44, %v565_v46  ;;  %v315_v6 = vmul.f32 %v313_v45, %v307_v4  ;;  %v316_v10 = vmul.f32 %v313_v45, %v308_v5 }
 0x11c   : > { %v569_v51 = vpop.eup %568  ;;  %v293_v52 = vadd.f32 %v292_v47, %v291_v49  ;;  %v294_v53 = vsel %vm197_vm2, %v567_v48, 0.0 }
 0x11d   : > { %507 = vmatpush3.bf16.msra.mxu1 %v317_v50  ;;  %v318_v54 = vpack.c.bf16 %v569_v51, %v567_v48  ;;  %v296_v56 = vsel %vm197_vm2, %v569_v51, 0.0 }
 0x11e   : > { %508 = vmatprep.subr.bf16.mxu1 %v614_v9  ;;  %v295_v55 = vadd.f32 %v294_v53, %v293_v52 }
 0x120   : > { %v297_v57 = vadd.f32 %v296_v56, %v295_v55 }
 0x121   : > { %509 = vmatpush3.bf16.msra.mxu1 %v318_v54 }
 0x122   : > { %v298_v59 = vrot.slane %v297_v57, 4 }
 0x124   : > { %v299_v60 = vadd.f32 %v298_v59, %v297_v57  ;;  %511 = vmatmul.mubr.msk.bf16.vlgmr.msra.gmra.mrb[0].mxu1 %vm335_vm5, %v327_v58 }
 0x126   : > { %v300_v61 = vrot.slane %v299_v60, 2 }
 0x128   : > { %v301_v62 = vadd.f32 %v300_v61, %v299_v60 }
 0x12a   : > { %v302_v0 = vrot.slane %v301_v62, 1 }
 0x12c   : > { %v303_v1 = vadd.f32 %v302_v0, %v301_v62 }
 0x12e   : > { %v304_v3 = vadd.f32 %v303_v1, %v290_v2 }
 0x130   : > { %306 = vst.msk [vmem:[#allocation3] sm:$0x1] %vm305_vm4, %v304_v3 }
 0x137   : > { %v391_v14 = vld [vmem:[#allocation3] sm:$0x1] (!%p490_p8) }
 0x138   : > { %570 = vrcp.f32 (!%p490_p8), %v391_v14 }
 0x142   : > { %v571_v15 = vpop.eup (!%p490_p8), %570 }
 0x143   : > { %v397_v18 = vrot.slane (!%p490_p8), %v571_v15, %v682_v30 }
 0x1f6   : > { %388 = sbr.rel (%p490_p8) target bundleno = 519 (0x207), region = 36 }
 0x1f7   : > { %v373_v7 = vpop.f32.mrb[0].mxu1 }
 0x1f8   : > { %v380_v8 = vadd.f32 %v373_v7, %v315_v6  ;;  %v512_v9 = vpop.f32.mrb[1].mxu1 }
 0x1f9   : > { %v376_v11 = vpop.f32.mrb[2].mxu1 }
 0x1fa   : > { %382 = vst.msk [vmem:[#allocation4] sm:$0xff] %vm197_vm2, %v380_v8  ;;  %v381_v12 = vadd.f32 %v376_v11, %v316_v10  ;;  %v513_v13 = vpop.f32.mrb[3].mxu1 }
 0x1fc   : > { %383 = vst.msk [vmem:[#allocation4 + $0x8] sm:$0xff] %vm197_vm2, %v381_v12 }
 0x201   : > { %v389_v16 = vld [vmem:[#allocation4] sm:$0xff] }
 0x202   : > { %v399_v19 = vmul.f32 %v397_v18, %v389_v16 }
 0x203   : > { %v390_v17 = vld [vmem:[#allocation4 + $0x8] sm:$0xff] }
 0x204   : > { %v400_v20 = vmul.f32 %v397_v18, %v390_v17  ;;  %401 = vst.msk [vmem:[%s667_s22] sm:$0xff] %vm197_vm2, %v399_v19 }
 0x206   : > { %402 = vst.msk [vmem:[%s667_s22 + $0x8] sm:$0xff] %vm197_vm2, %v400_v20 }
 0x207 PF: > { %s12_s13 = sadd.s32 1, %s610_s13   ;;  %s718_s9 = smov %s602_s11 }
 0x208   : > { %p9_p9 = scmp.ge.s32.totalorder %s12_s13, 6   ;;  %s719_s10 = smov %s606_s12 }
 0x209   : > { %s720_s11 = smov %s723_s14  ;;  %s721_s12 = smov %s727_s15 }
 0x20a   :  { %11 = sbr.rel (!%p9_p9) target bundleno = 3 (0x3), region = 66 }

// kernel: fps_attn_forward.5
= control target key start
LH: loop header
LB: loop body
LE: loop exit
PB: predicated region body
PF: predicated region fallthrough
CT: control target
= control target key end

     0   :  { %s856_s21 = smov 0   ;;  %s858_s22 = smov 0   ;;  %s950_s0 = inlined_call_operand.vmem [shape: f32[2,64,16], index: 0, kind: input, shape index: {}]   ;;  %s951_s1 = inlined_call_operand.vmem [shape: f32[2,64,16], index: 1, kind: input, shape index: {}]   ;;  %s952_s2 = inlined_call_operand.vmem [shape: f32[2,16,16], index: 2, kind: input, shape index: {}]   ;;  %s953_s3 = inlined_call_operand.vmem [shape: bf16[16,16], index: 3, kind: input, shape index: {}]   ;;  %s954_s4 = inlined_call_operand.vmem [shape: f32[1,16], index: 4, kind: input, shape index: {}]   ;;  %s955_s5 = inlined_call_operand.vmem [shape: f32[2,16], index: 5, kind: input, shape index: {}]   ;;  %s956_s6 = inlined_call_operand.vmem [shape: f32[2,64,16], index: 6, kind: output, shape index: {}]  }
   0x1   :  { %s860_s23 = smov 0   ;;  %s862_s24 = smov 0  }
   0x2   :  { %s864_s25 = smov 0  }
   0x3 LB: > { %s25_s26 = sadd.s32 1, %s811_s23  ;;  %s28_s27 = sadd.s32 1, %s815_s24  ;;  %s819_s25 = sphi %s864_s25, %s16_s25   ;;  %s815_s24 = sphi %s862_s24, %s960_s24   ;;  %s811_s23 = sphi %s860_s23, %s959_s23   ;;  %s807_s22 = sphi %s858_s22, %s958_s22   ;;  %s803_s21 = sphi %s856_s21, %s957_s21  }
   0x4   : > { %p26_p0 = scmp.ge.s32.totalorder %s25_s26, 2  ;;  %p683_p1 = scmp.ge.s32.totalorder %s819_s25, 1 }
   0x5   : > { %p260_p2 = scmp.lt.s32.totalorder %s819_s25, 5 }
   0x6   : > { %s962_s26 = smov (%p26_p0, %s25_s26), 0  ;;  %s964_s27 = smov (!%p26_p0, %s28_s27), %s815_s24 }
   0x7   : > { %p261_p3 = pnand %p683_p1, %p260_p2  ;;  %p30_p4 = scmp.ge.s32.totalorder %s964_s27, 2 }
   0x8   : > { %v764_v0 = vld [vmem:[%s953_s3] sm:$0xff] (!%p261_p3)   ;;  %s684_s30 = sshll.u32 (!%p261_p3), %s803_s21, 2  ;;  %p313_p5 = scmp.lt.s32.totalorder (!%p261_p3), %s807_s22, 1  ;;  %vm373_vm0 = vcmask (!%p261_p3), 130048  }
   0x9   : > { %s966_s27 = smov (%p30_p4, %s964_s27), 0  ;;  %264 = sbr.rel (%p261_p3) target bundleno = 784 (0x310), region = 44 }
   0xa   : > { %p315_p6 = scmp.lt.s32.totalorder (!%p261_p3), %s684_s30, 7  ;;  %712 = vmatprep.subr.bf16.mxu0 (!%p261_p3), %v764_v0  ;;  %v695_v7 = vld [vmem:[%s954_s4] ss:$0 sm:$0xff] (!%p261_p3)  ;;  %v702_v60 = vld [vmem:[%s955_s5 + $0x1] ss:$0 sm:$0xff] (!%p261_p3) }
   0xb   : > { %713 = vmatpush3.bf16.msra.mxu0 (!%p261_p3), %v764_v0  ;;  %v701_v58 = vld [vmem:[%s955_s5] ss:$0 sm:$0xff] (!%p261_p3) }
  0x10   : > { %s968_s22 = smov (!%p313_p5, %s807_s22), 1  ;;  %s970_s30 = smov (!%p315_p6, %s684_s30), 7 }
  0x11   : > { %s685_s7 = sshll.u32 %s968_s22, 3  ;;  %s705_s15 = sshll.u32 %s968_s22, 4 }
  0x12   : > { %s318_s8 = sadd.s32 %s685_s7, %s970_s30  ;;  %s336_s18 = scalar_lea.vmem %s952_s2, %s705_s15 }
  0x13   : > { %s892_s9 = sshll.u32 %s318_s8, 3  ;;  %v475_v40 = vld [vmem:[%s336_s18] sm:$0xff]  ;;  %v476_v41 = vld [vmem:[%s336_s18 + $0x8] sm:$0xff] }
  0x14   : > { %s320_s12 = scalar_lea.vmem %s950_s0, %s892_s9  ;;  %v477_v42 = vpack.c.bf16 %v476_v41, %v475_v40  ;;  %s330_s21 = scalar_lea.vmem %s951_s1, %s892_s9 }
  0x15   : > { %v348_v1 = vld [vmem:[%s320_s12] sm:$0xff]  ;;  %v349_v2 = vld [vmem:[%s320_s12 + $0x8] sm:$0xff]  ;;  %v350_v3 = vld [vmem:[%s320_s12 + $0x10] sm:$0xff]  ;;  %s345_s10 = scalar_lea.vmem %s956_s6, %s892_s9 }
  0x16   : > { %v356_v4 = vpack.c.bf16 %v349_v2, %v348_v1  ;;  %v351_v5 = vld [vmem:[%s320_s12 + $0x18] sm:$0xff]  ;;  %718 = vmatprep.subr.bf16.mxu1 %v477_v42  ;;  %v354_v57 = vld [vmem:[%s330_s21 + $0x10] sm:$0xff]  ;;  %v352_v59 = vld [vmem:[%s330_s21] sm:$0xff] }
  0x17   : > { %v357_v6 = vpack.c.bf16 %v351_v5, %v350_v3  ;;  %719 = vmatpush3.bf16.msra.mxu1 %v477_v42  ;;  %v355_v61 = vld [vmem:[%s330_s21 + $0x18] sm:$0xff]  ;;  %v541_v62 = vmul.f32 %v701_v58, %v354_v57  ;;  %v353_v63 = vld [vmem:[%s330_s21 + $0x8] sm:$0xff]  ;;  %v539_v1 = vmul.f32 %v701_v58, %v352_v59 }
  0x18   : > { %714 = vmatprep.mubr.msk.bf16.mxu0 %vm373_vm0, %v356_v4  ;;  %v542_v4 = vmul.f32 %v701_v58, %v355_v61 }
  0x19   : > { %715 = vmatmul.mubr.msk.bf16.vlgmr.msra.gmra.mrb[0].mxu0 %vm373_vm0, %v357_v6 }
  0xec   : > { %v716_v8 = vpop.f32.mrb[0].mxu0 }
  0xed   : > { %v423_v9 = vadd.f32 %v716_v8, %v695_v7  ;;  %v414_v10 = vpop.f32.mrb[1].mxu0 }
  0xee   : > { %v415_v11 = vadd.f32 %v695_v7, %v414_v10  ;;  %v717_v12 = vpop.f32.mrb[2].mxu0 }
  0xef   : > { %v426_v13 = vadd.f32 %v717_v12, %v695_v7  ;;  %v417_v14 = vpop.f32.mrb[3].mxu0  ;;  %v435_v15 = vsel %vm373_vm0, %v423_v9, -inf }
  0xf0   : > { %v418_v16 = vadd.f32 %v695_v7, %v417_v14  ;;  %436 = vmax.xlane.f32.xlu1 %v435_v15  ;;  %v429_v17 = vsel %vm373_vm0, %v415_v11, -inf  ;;  %v540_v7 = vmul.f32 %v701_v58, %v353_v63 }
  0xf1   : > { %430 = vmax.xlane.f32.xlu0 %v429_v17  ;;  %v438_v18 = vsel %vm373_vm0, %v426_v13, -inf }
  0xf2   : > { %v432_v19 = vsel %vm373_vm0, %v418_v16, -inf }
  0xf4   : > { %439 = vmax.xlane.f32.xlu1 %v438_v18 }
  0xf5   : > { %433 = vmax.xlane.f32.xlu0 %v432_v19 }
 0x17d   : > { %v437_v20 = vpop.xlane.xlu1 %436 }
 0x17e   : > { %v443_v21 = vsub.f32 %v423_v9, %v437_v20  ;;  %v431_v22 = vpop.xlane.xlu0 %430 }
 0x17f   : > { %v441_v23 = vsub.f32 %v415_v11, %v431_v22 }
 0x180   : > { %v449_v24 = vmul.f32 1.442695, %v443_v21 }
 0x181   : > { %v445_v25 = vmul.f32 1.442695, %v441_v23  ;;  %v440_v26 = vpop.xlane.xlu1 %439 }
 0x182   : > { %v444_v27 = vsub.f32 %v426_v13, %v440_v26  ;;  %v434_v28 = vpop.xlane.xlu0 %433 }
 0x183   : > { %765 = vpow2.f32 %v445_v25  ;;  %v442_v29 = vsub.f32 %v418_v16, %v434_v28 }
 0x184   : > { %767 = vpow2.f32 %v449_v24  ;;  %v451_v30 = vmul.f32 1.442695, %v444_v27 }
 0x185   : > { %v447_v31 = vmul.f32 1.442695, %v442_v29 }
 0x187   : > { %769 = vpow2.f32 %v447_v31 }
 0x188   : > { %771 = vpow2.f32 %v451_v30 }
 0x18d   : > { %v766_v32 = vpop.eup %765 }
 0x18e   : > { %v453_v33 = vsel %vm373_vm0, %v766_v32, 0.0  ;;  %v768_v34 = vpop.eup %767 }
 0x18f   : > { %454 = vadd.xlane.f32.xlu0 %v453_v33  ;;  %v459_v36 = vsel %vm373_vm0, %v768_v34, 0.0 }
 0x191   : > { %v770_v35 = vpop.eup %769 }
 0x192   : > { %v456_v37 = vsel %vm373_vm0, %v770_v35, 0.0  ;;  %v772_v38 = vpop.eup %771 }
 0x193   : > { %460 = vadd.xlane.f32.xlu0 %v459_v36  ;;  %457 = vadd.xlane.f32.xlu1 %v456_v37  ;;  %v462_v39 = vsel %vm373_vm0, %v772_v38, 0.0 }
 0x197   : > { %463 = vadd.xlane.f32.xlu1 %v462_v39 }
 0x21c   : > { %v455_v43 = vpop.xlane.xlu0 %454 }
 0x21d   : > { %773 = vrcp.f32 %v455_v43 }
 0x220   : > { %v458_v44 = vpop.xlane.xlu1 %457  ;;  %v461_v45 = vpop.xlane.xlu0 %460 }
 0x221   : > { %775 = vrcp.f32 %v458_v44 }
 0x222   : > { %777 = vrcp.f32 %v461_v45 }
 0x224   : > { %v464_v46 = vpop.xlane.xlu1 %463 }
 0x225   : > { %779 = vrcp.f32 %v464_v46 }
 0x227   : > { %v774_v47 = vpop.eup %773 }
 0x228   : > { %v469_v49 = vmul.f32 %v774_v47, %v766_v32 }
 0x22b   : > { %v776_v48 = vpop.eup %775 }
 0x22c   : > { %v470_v50 = vmul.f32 %v776_v48, %v770_v35  ;;  %v778_v51 = vpop.eup %777 }
 0x22d   : > { %v471_v54 = vmul.f32 %v778_v51, %v768_v34 }
 0x22e   : > { %v473_v52 = vpack.c.bf16 %v470_v50, %v469_v49 }
 0x22f   : > { %v780_v53 = vpop.eup %779 }
 0x230   : > { %720 = vmatprep.mubr.msk.bf16.mxu1 %vm373_vm0, %v473_v52  ;;  %v472_v55 = vmul.f32 %v780_v53, %v772_v38 }
 0x232   : > { %v474_v56 = vpack.c.bf16 %v472_v55, %v471_v54 }
 0x234   : > { %721 = vmatmul.mubr.msk.bf16.vlgmr.msra.gmra.mrb[0].mxu1 %vm373_vm0, %v474_v56 }
 0x307   : > { %v722_v0 = vpop.f32.mrb[0].mxu1 }
 0x308   : > { %v549_v2 = vmul.f32 %v722_v0, %v702_v60  ;;  %v518_v3 = vpop.f32.mrb[1].mxu1 }
 0x309   : > { %v547_v5 = vmul.f32 %v702_v60, %v518_v3  ;;  %v723_v6 = vpop.f32.mrb[2].mxu1 }
 0x30a   : > { %v553_v8 = vadd.f32 %v549_v2, %v541_v62  ;;  %v550_v9 = vmul.f32 %v723_v6, %v702_v60  ;;  %v521_v10 = vpop.f32.mrb[3].mxu1 }
 0x30b   : > { %v551_v11 = vadd.f32 %v547_v5, %v539_v1  ;;  %v548_v12 = vmul.f32 %v702_v60, %v521_v10 }
 0x30c   : > { %557 = vst.msk [vmem:[%s345_s10 + $0x10] sm:$0xff] %vm373_vm0, %v553_v8  ;;  %v554_v13 = vadd.f32 %v550_v9, %v542_v4 }
 0x30d   : > { %555 = vst.msk [vmem:[%s345_s10] sm:$0xff] %vm373_vm0, %v551_v11  ;;  %v552_v14 = vadd.f32 %v548_v12, %v540_v7 }
 0x30e   : > { %558 = vst.msk [vmem:[%s345_s10 + $0x18] sm:$0xff] %vm373_vm0, %v554_v13 }
 0x30f   : > { %556 = vst.msk [vmem:[%s345_s10 + $0x8] sm:$0xff] %vm373_vm0, %v552_v14 }
 0x310 PF: > { %s16_s25 = sadd.s32 1, %s819_s25   ;;  %s957_s21 = smov %s811_s23 }
 0x311   : > { %p13_p7 = scmp.ge.s32.totalorder %s16_s25, 6   ;;  %s958_s22 = smov %s815_s24 }
 0x312   : > { %s959_s23 = smov %s962_s26  ;;  %s960_s24 = smov %s966_s27 }
 0x313   :  { %15 = sbr.rel (!%p13_p7) target bundleno = 3 (0x3), region = 80 }

// kernel: fps_attn_forward.3
= control target key start
LH: loop header
LB: loop body
LE: loop exit
PB: predicated region body
PF: predicated region fallthrough
CT: control target
= control target key end

     0   :  { %s4280_s12 = smov 0   ;;  %s4804_s0 = inlined_call_operand.vmem [shape: f32[8,16,16], index: 0, kind: input, shape index: {}]   ;;  %s4805_s1 = inlined_call_operand.vmem [shape: bf16[12,16,12], index: 1, kind: input, shape index: {}]   ;;  %s4806_s2 = inlined_call_operand.vmem [shape: bf16[4,12,16], index: 2, kind: input, shape index: {}]   ;;  %s4807_s3 = inlined_call_operand.vmem [shape: f32[8,16,16], index: 3, kind: output, shape index: {}]  }
   0x1 LB: > { %s3415_s13 = sadd.s32 4294967295, %s4256_s12   ;;  %p3419_p0 = scmp.ge.s32.totalorder %s4256_s12, 1  ;;  %s4256_s12 = sphi %s4280_s12, %s13_s12  }
   0x2   : > { %p139_p1 = scmp.lt.s32.totalorder %s4256_s12, 3 }
   0x4   : > { %p140_p2 = pnand %p3419_p0, %p139_p1 }
   0x5   : > { %v4106_v0 = vld [vmem:[%s4805_s1] sm:$0xff] (!%p140_p2)   ;;  %s3420_s16 = sshll.u32 (!%p140_p2), %s3415_s13, 2  ;;  %vm200_vm0 = vcmask (!%p140_p2), 130048   ;;  %v4258_v15 = vmov (!%p140_p2), 0.0   ;;  %vm4259_vm1 = vmmov (!%p140_p2), 0   ;;  %vm434_vm2 = vcmask (!%p140_p2), 97280  }
   0x6   : > { %143 = sbr.rel (%p140_p2) target bundleno = 3798 (0xed6), region = 32  ;;  %p166_p3 = scmp.lt.s32.totalorder (!%p140_p2), %s3420_s16, 7  ;;  %4066 = vmatprep.subr.bf16.mxu1 (!%p140_p2), %v4106_v0  ;;  %v4107_v1 = vld [vmem:[%s4805_s1 + $0x20] sm:$0xff] (!%p140_p2)   ;;  %3714 = vmatprep.subr.bf16.mxu0 (!%p140_p2), %v4106_v0  ;;  %vm1615_vm3 = vcmask (!%p140_p2), 1045504  }
   0x7   : > { %4067 = vmatpush3.bf16.msra.mxu1 (!%p140_p2), %v4106_v0  ;;  %3715 = vmatpush3.bf16.msra.mxu0 (!%p140_p2), %v4106_v0  ;;  %v4108_v14 = vld [vmem:[%s4805_s1 + $0x40] sm:$0xff] (!%p140_p2)  }
   0x8   : > { %3724 = vmatprep.subr.bf16.mxu1 (!%p140_p2), %v4107_v1  ;;  %3734 = vmatprep.subr.bf16.mxu0 (!%p140_p2), %v4108_v14 }
   0xd   : > { %s4809_s16 = smov (!%p166_p3, %s3420_s16), 7 }
   0xe   : > { %s3568_s19 = sshll.u32 %s4809_s16, 4 }
   0xf   : > { %s170_s22 = scalar_lea.vmem %s4804_s0, %s3568_s19  ;;  %s177_s29 = scalar_lea.vmem %s4807_s3, %s3568_s19 }
  0x10   : > { %v184_v2 = vld [vmem:[%s170_s22 + $0x20] sm:$0xff]  ;;  %v185_v3 = vld [vmem:[%s170_s22 + $0x28] sm:$0xff]  ;;  %v186_v4 = vld [vmem:[%s170_s22 + $0x30] sm:$0xff] }
  0x11   : > { %v4302_v5 = vpack.c.bf16 %v185_v3, %v184_v2  ;;  %v187_v6 = vld [vmem:[%s170_s22 + $0x38] sm:$0xff]  ;;  %v180_v7 = vld [vmem:[%s170_s22] sm:$0xff]  ;;  %v181_v8 = vld [vmem:[%s170_s22 + $0x8] sm:$0xff] }
  0x12   : > { %v4304_v9 = vpack.c.bf16 %v187_v6, %v186_v4  ;;  %v4306_v10 = vpack.c.bf16 %v181_v8, %v180_v7  ;;  %v182_v11 = vld [vmem:[%s170_s22 + $0x10] sm:$0xff]  ;;  %v183_v12 = vld [vmem:[%s170_s22 + $0x18] sm:$0xff] }
  0x13   : > { %3720 = vmatprep.mubr.msk.bf16.mxu1 %vm200_vm0, %v4302_v5  ;;  %v4312_v13 = vpack.c.bf16 %v183_v12, %v182_v11 }
  0x14   : > { %3721 = vmatmul.mubr.msk.bf16.vlgmr.msra.gmra.mrb[0].mxu1 %vm200_vm0, %v4304_v9  ;;  %3716 = vmatprep.mubr.msk.bf16.mxu0 %vm200_vm0, %v4306_v10 }
  0x15   : > { %3725 = vmatpush3.bf16.msra.mxu1 %v4107_v1  ;;  %3726 = vmatprep.mubr.msk.bf16.mxu1 %vm200_vm0, %v4306_v10 }
  0x16   : > { %3717 = vmatmul.mubr.msk.bf16.vlgmr.msra.gmra.mrb[0].mxu0 %vm200_vm0, %v4312_v13  ;;  %3744 = vmatprep.subr.bf16.mxu1 %v4258_v15 }
  0x17   : > { %3736 = vmatprep.mubr.msk.bf16.mxu0 %vm200_vm0, %v4306_v10  ;;  %3735 = vmatpush3.bf16.msra.mxu0 %v4108_v14 }
  0x18   : > { %3756 = vmatprep.subr.bf16.mxu0 %v4258_v15 }
  0x1c   : > { %3727 = vmatmul.mubr.msk.bf16.vlgmr.msra.gmra.mrb[4].mxu1 %vm200_vm0, %v4312_v13 }
  0x1d   : > { %3730 = vmatprep.mubr.msk.bf16.mxu1 %vm200_vm0, %v4302_v5 }
  0x1e   : > { %3737 = vmatmul.mubr.msk.bf16.vlgmr.msra.gmra.mrb[4].mxu0 %vm200_vm0, %v4312_v13 }
  0x1f   : > { %3740 = vmatprep.mubr.msk.bf16.mxu0 %vm200_vm0, %v4302_v5 }
  0x24   : > { %3731 = vmatmul.mubr.msk.bf16.gmra.mrb[8].mxu1 %vm200_vm0, %v4304_v9 }
  0x25   : > { %3746 = vmatprep.mubr.msk.bf16.mxu1 %vm4259_vm1, %v4258_v15 }
  0x26   : > { %3741 = vmatmul.mubr.msk.bf16.gmra.mrb[8].mxu0 %vm200_vm0, %v4304_v9 }
  0x27   : > { %3758 = vmatprep.mubr.msk.bf16.mxu0 %vm4259_vm1, %v4258_v15 }
  0xe7   : > { %v3722_v16 = vpop.f32.mrb[0].mxu1 }
  0xe8   : > { %v263_v17 = vpop.f32.mrb[1].mxu1 }
  0xe9   : > { %v3723_v18 = vpop.f32.mrb[2].mxu1  ;;  %v3718_v19 = vpop.f32.mrb[0].mxu0 }
  0xea   : > { %v429_v20 = vpack.c.bf16 %v3723_v18, %v3722_v16  ;;  %v266_v21 = vpop.f32.mrb[3].mxu1  ;;  %v247_v22 = vpop.f32.mrb[1].mxu0 }
  0xeb   : > { %v428_v23 = vpack.c.bf16 %v266_v21, %v263_v17  ;;  %v3719_v24 = vpop.f32.mrb[2].mxu0 }
  0xec   : > { %v427_v25 = vpack.c.bf16 %v3719_v24, %v3718_v19  ;;  %v250_v26 = vpop.f32.mrb[3].mxu0 }
  0xed   : > { %v426_v27 = vpack.c.bf16 %v250_v26, %v247_v22 }
  0xef   : > { %v3728_v28 = vpop.f32.mrb[4].mxu1 }
  0xf0   : > { %v321_v29 = vpop.f32.mrb[5].mxu1 }
  0xf1   : > { %v3729_v30 = vpop.f32.mrb[6].mxu1  ;;  %v3738_v44 = vpop.f32.mrb[4].mxu0 }
  0xf2   : > { %v431_v31 = vpack.c.bf16 %v3729_v30, %v3728_v28  ;;  %v324_v32 = vpop.f32.mrb[7].mxu1  ;;  %v395_v45 = vpop.f32.mrb[5].mxu0 }
  0xf3   : > { %v430_v33 = vpack.c.bf16 %v324_v32, %v321_v29  ;;  %v3739_v46 = vpop.f32.mrb[6].mxu0 }
  0xf4   : > { %v486_v41 = vsel %vm434_vm2, %v431_v31, 0  ;;  %v716_v47 = vpack.c.bf16 %v3739_v46, %v3738_v44  ;;  %v398_v48 = vpop.f32.mrb[7].mxu0 }
  0xf5   : > { %v439_v34 = vsel %vm434_vm2, %v430_v33, 0  ;;  %v715_v49 = vpack.c.bf16 %v398_v48, %v395_v45 }
  0xf6   : > { %3745 = vmatpush3.bf16.xpose.msra.mxu1 %v439_v34 }
  0xf7   : > { %v3732_v35 = vpop.f32.mrb[8].mxu1  ;;  %3750 = vmatprep.subr.bf16.mxu1 %v4258_v15 }
  0xf8   : > { %v337_v36 = vpop.f32.mrb[9].mxu1 }
  0xf9   : > { %v3733_v37 = vpop.f32.mrb[10].mxu1  ;;  %v4363_v50 = vpop.f32.mrb[8].mxu0 }
  0xfa   : > { %v433_v38 = vpack.c.bf16 %v3733_v37, %v3732_v35  ;;  %v340_v39 = vpop.f32.mrb[11].mxu1  ;;  %v4365_v51 = vpop.f32.mrb[9].mxu0 }
  0xfb   : > { %v432_v40 = vpack.c.bf16 %v340_v39, %v337_v36  ;;  %v4367_v52 = vpop.f32.mrb[10].mxu0 }
  0xfc   : > { %v580_v43 = vsel %vm434_vm2, %v433_v38, 0  ;;  %v718_v53 = vpack.c.bf16 %v4367_v52, %v4363_v50  ;;  %v4372_v54 = vpop.f32.mrb[11].mxu0 }
  0xfd   : > { %v533_v42 = vsel %vm434_vm2, %v432_v40, 0  ;;  %3747 = vmatmul.mubr.msk.bf16.vlgmr.msra.gmra.mrb[12].mxu1 %vm434_vm2, %v426_v27  ;;  %v717_v55 = vpack.c.bf16 %v4372_v54, %v4365_v51  ;;  %v4111_v51 = vld [vmem:[%s4805_s1 + $0x48] sm:$0xff]  }
  0xfe   : > { %3751 = vmatpush3.bf16.xpose.msra.mxu1 %v486_v41  ;;  %3757 = vmatpush3.bf16.xpose.msra.mxu0 %v533_v42 }
  0xff   : > { %3752 = vmatprep.mubr.msk.bf16.mxu1 %vm4259_vm1, %v4258_v15  ;;  %3762 = vmatprep.subr.bf16.mxu1 %v4258_v15 }
 0x100   : > { %3768 = vmatprep.subr.bf16.mxu0 %v4258_v15 }
 0x105   : > { %3753 = vmatmul.mubr.msk.bf16.vlgmr.msra.gmra.mrb[16].mxu1 %vm434_vm2, %v427_v25  ;;  %3759 = vmatmul.mubr.msk.bf16.vlgmr.msra.gmra.mrb[12].mxu0 %vm434_vm2, %v428_v23 }
 0x106   : > { %3763 = vmatpush3.bf16.xpose.msra.mxu1 %v580_v43  ;;  %3764 = vmatprep.mubr.msk.bf16.mxu1 %vm4259_vm1, %v4258_v15 }
 0x107   : > { %3774 = vmatprep.subr.bf16.mxu1 %v4258_v15  ;;  %3770 = vmatprep.mubr.msk.bf16.mxu0 %vm4259_vm1, %v4258_v15 }
 0x108   : > { %3769 = vmatpush3.bf16.msra.mxu0 %v715_v49 }
 0x109   : > { %3780 = vmatprep.subr.bf16.mxu0 %v4258_v15 }
 0x10d   : > { %3765 = vmatmul.mubr.msk.bf16.vlgmr.msra.gmra.mrb[20].mxu1 %vm434_vm2, %v429_v20 }
 0x10e   : > { %3776 = vmatprep.mubr.msk.bf16.mxu1 %vm4259_vm1, %v4258_v15  ;;  %3775 = vmatpush3.bf16.msra.mxu1 %v716_v47 }
 0x10f   : > { %3786 = vmatprep.subr.bf16.mxu1 %v4258_v15 }
 0x1d0   : > { %v475_v56 = vpop.f32.mrb[12].mxu1 }
 0x1d1   : > { %v3748_v57 = vpop.f32.mrb[13].mxu1  ;;  %v623_v58 = vsel %vm200_vm0, %v475_v56, -inf }
 0x1d2   : > { %624 = vmax.xlane.f32.xlu1 %v623_v58  ;;  %v478_v59 = vpop.f32.mrb[14].mxu1 }
 0x1d3   : > { %v3749_v60 = vpop.f32.mrb[15].mxu1  ;;  %v626_v61 = vsel %vm200_vm0, %v478_v59, -inf }
 0x1d6   : > { %627 = vmax.xlane.f32.xlu1 %v626_v61 }
 0x1d8   : > { %v522_v62 = vpop.f32.mrb[16].mxu1  ;;  %v569_v63 = vpop.f32.mrb[12].mxu0 }
 0x1d9   : > { %v3754_v0 = vpop.f32.mrb[17].mxu1  ;;  %v3760_v1 = vpop.f32.mrb[13].mxu0  ;;  %v629_v2 = vsel %vm200_vm0, %v522_v62, -inf  ;;  %v635_v19 = vsel %vm200_vm0, %v569_v63, -inf }
 0x1da   : > { %630 = vmax.xlane.f32.xlu0 %v629_v2  ;;  %v525_v3 = vpop.f32.mrb[18].mxu1  ;;  %v572_v4 = vpop.f32.mrb[14].mxu0 }
 0x1db   : > { %v3755_v6 = vpop.f32.mrb[19].mxu1  ;;  %v3761_v7 = vpop.f32.mrb[15].mxu0  ;;  %v632_v8 = vsel %vm200_vm0, %v525_v3, -inf  ;;  %v638_v20 = vsel %vm200_vm0, %v572_v4, -inf }
 0x1de   : > { %633 = vmax.xlane.f32.xlu0 %v632_v8 }
 0x1e0   : > { %v616_v11 = vpop.f32.mrb[20].mxu1 }
 0x1e1   : > { %v3766_v12 = vpop.f32.mrb[21].mxu1  ;;  %v641_v14 = vsel %vm200_vm0, %v616_v11, -inf }
 0x1e2   : > { %642 = vmax.xlane.f32.xlu0 %v641_v14  ;;  %v619_v16 = vpop.f32.mrb[22].mxu1 }
 0x1e3   : > { %v3767_v17 = vpop.f32.mrb[23].mxu1  ;;  %v644_v18 = vsel %vm200_vm0, %v619_v16, -inf }
 0x1e4   : > { %645 = vmax.xlane.f32.xlu1 %v644_v18 }
 0x1e6   : > { %636 = vmax.xlane.f32.xlu0 %v635_v19 }
 0x1e8   : > { %639 = vmax.xlane.f32.xlu1 %v638_v20 }
 0x25f   : > { %v625_v21 = vpop.xlane.xlu1 %624 }
 0x260   : > { %v647_v22 = vsub.f32 %v475_v56, %v625_v21 }
 0x262   : > { %v655_v26 = vmul.f32 1.442695, %v647_v22  ;;  %v4109_v22 = vld [vmem:[%s4805_s1 + $0x28] sm:$0xff]  }
 0x263   : > { %v628_v23 = vpop.xlane.xlu1 %627 }
 0x264   : > { %v648_v27 = vsub.f32 %v478_v59, %v628_v23 }
 0x266   : > { %v657_v31 = vmul.f32 1.442695, %v648_v27 }
 0x267   : > { %v631_v24 = vpop.xlane.xlu0 %630 }
 0x268   : > { %v649_v25 = vsub.f32 %v522_v62, %v631_v24 }
 0x26a   : > { %v659_v28 = vmul.f32 1.442695, %v649_v25 }
 0x26b   : > { %v634_v29 = vpop.xlane.xlu0 %633 }
 0x26c   : > { %4122 = vpow2.f32 %v659_v28  ;;  %v650_v30 = vsub.f32 %v525_v3, %v634_v29  ;;  %v4110_v28 = vld [vmem:[%s4805_s1 + $0x8] sm:$0xff]  }
 0x26d   : > { %4124 = vpow2.f32 %v655_v26 }
 0x26e   : > { %v661_v32 = vmul.f32 1.442695, %v650_v30 }
 0x26f   : > { %v643_v33 = vpop.xlane.xlu0 %642 }
 0x270   : > { %4126 = vpow2.f32 %v661_v32  ;;  %v653_v34 = vsub.f32 %v616_v11, %v643_v33 }
 0x271   : > { %v646_v35 = vpop.xlane.xlu1 %645  ;;  %4128 = vpow2.f32 %v657_v31 }
 0x272   : > { %v667_v36 = vmul.f32 1.442695, %v653_v34  ;;  %v654_v37 = vsub.f32 %v619_v16, %v646_v35 }
 0x273   : > { %v637_v38 = vpop.xlane.xlu0 %636 }
 0x274   : > { %4130 = vpow2.f32 %v667_v36  ;;  %v669_v39 = vmul.f32 1.442695, %v654_v37  ;;  %v651_v40 = vsub.f32 %v569_v63, %v637_v38 }
 0x275   : > { %v640_v41 = vpop.xlane.xlu1 %639 }
 0x276   : > { %v4123_v42 = vpop.eup %4122  ;;  %4132 = vpow2.f32 %v669_v39  ;;  %v663_v43 = vmul.f32 1.442695, %v651_v40  ;;  %v652_v44 = vsub.f32 %v572_v4, %v640_v41 }
 0x277   : > { %v677_v45 = vsel %vm200_vm0, %v4123_v42, 0.0  ;;  %v4125_v46 = vpop.eup %4124 }
 0x278   : > { %4134 = vpow2.f32 %v663_v43  ;;  %v665_v47 = vmul.f32 1.442695, %v652_v44  ;;  %678 = vadd.xlane.f32.xlu0 %v677_v45  ;;  %v671_v49 = vsel %vm200_vm0, %v4125_v46, 0.0 }
 0x27a   : > { %v4127_v48 = vpop.eup %4126  ;;  %4136 = vpow2.f32 %v665_v47 }
 0x27b   : > { %v680_v56 = vsel %vm200_vm0, %v4127_v48, 0.0  ;;  %v4129_v57 = vpop.eup %4128 }
 0x27c   : > { %672 = vadd.xlane.f32.xlu0 %v671_v49  ;;  %681 = vadd.xlane.f32.xlu1 %v680_v56  ;;  %v674_v60 = vsel %vm200_vm0, %v4129_v57, 0.0 }
 0x27e   : > { %v4131_v58 = vpop.eup %4130 }
 0x27f   : > { %v689_v59 = vsel %vm200_vm0, %v4131_v58, 0.0 }
 0x280   : > { %v4133_v61 = vpop.eup %4132  ;;  %690 = vadd.xlane.f32.xlu0 %v689_v59  ;;  %675 = vadd.xlane.f32.xlu1 %v674_v60 }
 0x281   : > { %v692_v0 = vsel %vm200_vm0, %v4133_v61, 0.0 }
 0x282   : > { %v4135_v62 = vpop.eup %4134 }
 0x283   : > { %v683_v63 = vsel %vm200_vm0, %v4135_v62, 0.0 }
 0x284   : > { %v4137_v1 = vpop.eup %4136  ;;  %684 = vadd.xlane.f32.xlu0 %v683_v63  ;;  %693 = vadd.xlane.f32.xlu1 %v692_v0 }
 0x285   : > { %v686_v2 = vsel %vm200_vm0, %v4137_v1, 0.0 }
 0x288   : > { %687 = vadd.xlane.f32.xlu1 %v686_v2 }
 0x305   : > { %v679_v3 = vpop.xlane.xlu0 %678 }
 0x306   : > { %4138 = vrcp.f32 %v679_v3 }
 0x309   : > { %v673_v4 = vpop.xlane.xlu0 %672  ;;  %v682_v6 = vpop.xlane.xlu1 %681 }
 0x30a   : > { %4140 = vrcp.f32 %v682_v6 }
 0x30b   : > { %4142 = vrcp.f32 %v673_v4 }
 0x30d   : > { %v691_v7 = vpop.xlane.xlu0 %690  ;;  %v676_v8 = vpop.xlane.xlu1 %675 }
 0x30e   : > { %4144 = vrcp.f32 %v676_v8 }
 0x30f   : > { %4146 = vrcp.f32 %v691_v7 }
 0x310   : > { %v4139_v14 = vpop.eup %4138 }
 0x311   : > { %v685_v11 = vpop.xlane.xlu0 %684  ;;  %v694_v12 = vpop.xlane.xlu1 %693  ;;  %v705_v18 = vmul.f32 %v4139_v14, %v4123_v42 }
 0x312   : > { %4148 = vrcp.f32 %v694_v12 }
 0x313   : > { %4150 = vrcp.f32 %v685_v11 }
 0x314   : > { %v4141_v16 = vpop.eup %4140 }
 0x315   : > { %v688_v17 = vpop.xlane.xlu1 %687  ;;  %v706_v19 = vmul.f32 %v4141_v16, %v4127_v48  ;;  %v4143_v20 = vpop.eup %4142 }
 0x316   : > { %4152 = vrcp.f32 %v688_v17  ;;  %v703_v24 = vmul.f32 %v4143_v20, %v4125_v46 }
 0x317   : > { %v712_v21 = vpack.c.bf16 %v706_v19, %v705_v18 }
 0x318   : > { %v4145_v23 = vpop.eup %4144 }
 0x319   : > { %v704_v25 = vmul.f32 %v4145_v23, %v4129_v57  ;;  %3777 = vmatmul.mubr.msk.bf16.vlgmr.msra.gmra.mrb[24].mxu1 %vm200_vm0, %v712_v21  ;;  %v4147_v26 = vpop.eup %4146 }
 0x31a   : > { %3787 = vmatpush3.bf16.msra.mxu1 %v718_v53  ;;  %3788 = vmatprep.mubr.msk.bf16.mxu1 %vm4259_vm1, %v4258_v15  ;;  %v709_v31 = vmul.f32 %v4147_v26, %v4131_v58 }
 0x31b   : > { %v711_v27 = vpack.c.bf16 %v704_v25, %v703_v24  ;;  %3802 = vmatprep.subr.bf16.mxu1 %v4109_v22 }
 0x31c   : > { %v4149_v29 = vpop.eup %4148 }
 0x31d   : > { %v4151_v30 = vpop.eup %4150  ;;  %v710_v32 = vmul.f32 %v4149_v29, %v4133_v61  ;;  %3771 = vmatmul.mubr.msk.bf16.vlgmr.msra.gmra.mrb[16].mxu0 %vm200_vm0, %v711_v27 }
 0x31e   : > { %3781 = vmatpush3.bf16.msra.mxu0 %v717_v55  ;;  %3782 = vmatprep.mubr.msk.bf16.mxu0 %vm4259_vm1, %v4258_v15  ;;  %v707_v53 = vmul.f32 %v4151_v30, %v4135_v62 }
 0x31f   : > { %v714_v52 = vpack.c.bf16 %v710_v32, %v709_v31  ;;  %3792 = vmatprep.subr.bf16.mxu0 %v4110_v28 }
 0x320   : > { %v4153_v50 = vpop.eup %4152 }
 0x321   : > { %v708_v33 = vmul.f32 %v4153_v50, %v4137_v1  ;;  %3789 = vmatmul.mubr.msk.bf16.vlgmr.msra.gmra.mrb[28].mxu1 %vm200_vm0, %v714_v52 }
 0x322   : > { %3803 = vmatpush3.bf16.msra.mxu1 %v4109_v22  ;;  %3804 = vmatprep.mubr.msk.bf16.mxu1 %vm200_vm0, %v4306_v10 }
 0x323   : > { %v713_v34 = vpack.c.bf16 %v708_v33, %v707_v53  ;;  %3822 = vmatprep.subr.bf16.mxu1 %v4258_v15 }
 0x325   : > { %3783 = vmatmul.mubr.msk.bf16.vlgmr.msra.gmra.mrb[20].mxu0 %vm200_vm0, %v713_v34 }
 0x326   : > { %3793 = vmatpush3.bf16.msra.mxu0 %v4110_v28  ;;  %3794 = vmatprep.mubr.msk.bf16.mxu0 %vm200_vm0, %v4306_v10 }
 0x327   : > { %3812 = vmatprep.subr.bf16.mxu0 %v4111_v51 }
 0x329   : > { %3805 = vmatmul.mubr.msk.bf16.vlgmr.msra.gmra.mrb[32].mxu1 %vm200_vm0, %v4312_v13 }
 0x32a   : > { %3808 = vmatprep.mubr.msk.bf16.mxu1 %vm200_vm0, %v4302_v5 }
 0x32d   : > { %3795 = vmatmul.mubr.msk.bf16.vlgmr.msra.gmra.mrb[24].mxu0 %vm200_vm0, %v4312_v13 }
 0x32e   : > { %3798 = vmatprep.mubr.msk.bf16.mxu0 %vm200_vm0, %v4302_v5  ;;  %3813 = vmatpush3.bf16.msra.mxu0 %v4111_v51 }
 0x32f   : > { %3834 = vmatprep.subr.bf16.mxu0 %v4258_v15 }
 0x331   : > { %3809 = vmatmul.mubr.msk.bf16.gmra.mrb[36].mxu1 %vm200_vm0, %v4304_v9 }
 0x332   : > { %3824 = vmatprep.mubr.msk.bf16.mxu1 %vm4259_vm1, %v4258_v15 }
 0x335   : > { %3799 = vmatmul.mubr.msk.bf16.gmra.mrb[28].mxu0 %vm200_vm0, %v4304_v9 }
 0x336   : > { %3814 = vmatprep.mubr.msk.bf16.mxu0 %vm200_vm0, %v4306_v10 }
 0x33d   : > { %3815 = vmatmul.mubr.msk.bf16.vlgmr.msra.gmra.mrb[32].mxu0 %vm200_vm0, %v4312_v13 }
 0x33e   : > { %3818 = vmatprep.mubr.msk.bf16.mxu0 %vm200_vm0, %v4302_v5 }
 0x345   : > { %3819 = vmatmul.mubr.msk.bf16.gmra.mrb[36].mxu0 %vm200_vm0, %v4304_v9 }
 0x346   : > { %3836 = vmatprep.mubr.msk.bf16.mxu0 %vm4259_vm1, %v4258_v15 }
 0x3ec   : > { %v4446_v54 = vpop.f32.mrb[24].mxu1 }
 0x3ed   : > { %v3778_v55 = vpop.f32.mrb[25].mxu1 }
 0x3ee   : > { %v4448_v35 = vpop.f32.mrb[26].mxu1 }
 0x3ef   : > { %v896_v36 = vpack.c.bf16 %v4448_v35, %v4446_v54  ;;  %v3779_v37 = vpop.f32.mrb[27].mxu1 }
 0x3f0   : > { %v4452_v38 = vpop.f32.mrb[16].mxu0 }
 0x3f1   : > { %v3772_v39 = vpop.f32.mrb[17].mxu0 }
 0x3f2   : > { %v4454_v40 = vpop.f32.mrb[18].mxu0 }
 0x3f3   : > { %v895_v41 = vpack.c.bf16 %v4454_v40, %v4452_v38  ;;  %v3773_v42 = vpop.f32.mrb[19].mxu0 }
 0x3f4   : > { %v4458_v43 = vpop.f32.mrb[28].mxu1 }
 0x3f5   : > { %v3790_v44 = vpop.f32.mrb[29].mxu1 }
 0x3f6   : > { %v4460_v45 = vpop.f32.mrb[30].mxu1 }
 0x3f7   : > { %v898_v46 = vpack.c.bf16 %v4460_v45, %v4458_v43  ;;  %v3791_v47 = vpop.f32.mrb[31].mxu1 }
 0x3f8   : > { %v4464_v48 = vpop.f32.mrb[20].mxu0 }
 0x3f9   : > { %v3784_v49 = vpop.f32.mrb[21].mxu0 }
 0x3fa   : > { %v4466_v56 = vpop.f32.mrb[22].mxu0 }
 0x3fb   : > { %v897_v57 = vpack.c.bf16 %v4466_v56, %v4464_v48  ;;  %v3785_v58 = vpop.f32.mrb[23].mxu0 }
 0x3fc   : > { %v3806_v59 = vpop.f32.mrb[32].mxu1 }
 0x3fd   : > { %v1018_v60 = vpop.f32.mrb[33].mxu1 }
 0x3fe   : > { %v3807_v61 = vpop.f32.mrb[34].mxu1 }
 0x3ff   : > { %v1128_v62 = vpack.c.bf16 %v3807_v61, %v3806_v59  ;;  %v1021_v63 = vpop.f32.mrb[35].mxu1 }
 0x400   : > { %v1127_v0 = vpack.c.bf16 %v1021_v63, %v1018_v60  ;;  %v3796_v1 = vpop.f32.mrb[24].mxu0 }
 0x401   : > { %v944_v2 = vpop.f32.mrb[25].mxu0  ;;  %v1182_v21 = vsel %vm434_vm2, %v1128_v62, 0 }
 0x402   : > { %v1135_v3 = vsel %vm434_vm2, %v1127_v0, 0  ;;  %v3797_v4 = vpop.f32.mrb[26].mxu0 }
 0x403   : > { %v1124_v6 = vpack.c.bf16 %v3797_v4, %v3796_v1  ;;  %3823 = vmatpush3.bf16.xpose.msra.mxu1 %v1135_v3  ;;  %v947_v7 = vpop.f32.mrb[27].mxu0 }
 0x404   : > { %v1123_v8 = vpack.c.bf16 %v947_v7, %v944_v2  ;;  %v3810_v11 = vpop.f32.mrb[36].mxu1  ;;  %3828 = vmatprep.subr.bf16.mxu1 %v4258_v15 }
 0x405   : > { %v1034_v12 = vpop.f32.mrb[37].mxu1 }
 0x406   : > { %v3811_v14 = vpop.f32.mrb[38].mxu1 }
 0x407   : > { %v1130_v16 = vpack.c.bf16 %v3811_v14, %v3810_v11  ;;  %v1037_v17 = vpop.f32.mrb[39].mxu1 }
 0x408   : > { %v1129_v18 = vpack.c.bf16 %v1037_v17, %v1034_v12  ;;  %v3800_v19 = vpop.f32.mrb[28].mxu0 }
 0x409   : > { %v960_v20 = vpop.f32.mrb[29].mxu0  ;;  %v1276_v27 = vsel %vm434_vm2, %v1130_v16, 0 }
 0x40a   : > { %v1229_v22 = vsel %vm434_vm2, %v1129_v18, 0  ;;  %3825 = vmatmul.mubr.msk.bf16.vlgmr.msra.gmra.mrb[40].mxu1 %vm434_vm2, %v1123_v8  ;;  %v3801_v23 = vpop.f32.mrb[30].mxu0 }
 0x40b   : > { %3829 = vmatpush3.bf16.xpose.msra.mxu1 %v1182_v21  ;;  %3835 = vmatpush3.bf16.xpose.msra.mxu0 %v1229_v22  ;;  %v1126_v24 = vpack.c.bf16 %v3801_v23, %v3800_v19  ;;  %v963_v25 = vpop.f32.mrb[31].mxu0 }
 0x40c   : > { %3830 = vmatprep.mubr.msk.bf16.mxu1 %vm4259_vm1, %v4258_v15  ;;  %v1125_v26 = vpack.c.bf16 %v963_v25, %v960_v20  ;;  %3840 = vmatprep.subr.bf16.mxu1 %v4258_v15 }
 0x40d   : > { %3846 = vmatprep.subr.bf16.mxu0 %v4258_v15 }
 0x410   : > { %v3816_v28 = vpop.f32.mrb[32].mxu0 }
 0x411   : > { %v1092_v29 = vpop.f32.mrb[33].mxu0 }
 0x412   : > { %3831 = vmatmul.mubr.msk.bf16.vlgmr.msra.gmra.mrb[44].mxu1 %vm434_vm2, %v1124_v6  ;;  %3837 = vmatmul.mubr.msk.bf16.vlgmr.msra.gmra.mrb[40].mxu0 %vm434_vm2, %v1125_v26  ;;  %v3817_v30 = vpop.f32.mrb[34].mxu0 }
 0x413   : > { %3841 = vmatpush3.bf16.xpose.msra.mxu1 %v1276_v27  ;;  %3842 = vmatprep.mubr.msk.bf16.mxu1 %vm4259_vm1, %v4258_v15  ;;  %v1412_v31 = vpack.c.bf16 %v3817_v30, %v3816_v28  ;;  %v1095_v32 = vpop.f32.mrb[35].mxu0 }
 0x414   : > { %3852 = vmatprep.subr.bf16.mxu1 %v4258_v15  ;;  %3848 = vmatprep.mubr.msk.bf16.mxu0 %vm4259_vm1, %v4258_v15  ;;  %v1411_v50 = vpack.c.bf16 %v1095_v32, %v1092_v29 }
 0x416   : > { %3847 = vmatpush3.bf16.msra.mxu0 %v1411_v50 }
 0x417   : > { %3858 = vmatprep.subr.bf16.mxu0 %v4258_v15 }
 0x418   : > { %v4490_v52 = vpop.f32.mrb[36].mxu0 }
 0x419   : > { %v4492_v53 = vpop.f32.mrb[37].mxu0 }
 0x41a   : > { %3843 = vmatmul.mubr.msk.bf16.vlgmr.msra.gmra.mrb[48].mxu1 %vm434_vm2, %v1126_v24  ;;  %v4496_v33 = vpop.f32.mrb[38].mxu0 }
 0x41b   : > { %3854 = vmatprep.mubr.msk.bf16.mxu1 %vm4259_vm1, %v4258_v15  ;;  %3853 = vmatpush3.bf16.msra.mxu1 %v1412_v31  ;;  %v1414_v34 = vpack.c.bf16 %v4496_v33, %v4490_v52  ;;  %v4500_v51 = vpop.f32.mrb[39].mxu0  ;;  %v4113_v33 = vld [vmem:[%s4805_s1 + $0x30] sm:$0xff]  }
 0x41c   : > { %3864 = vmatprep.subr.bf16.mxu1 %v4258_v15  ;;  %v1413_v55 = vpack.c.bf16 %v4500_v51, %v4492_v53  ;;  %v4114_v53 = vld [vmem:[%s4806_s2 + $0x8] sm:$0x3f]  }
 0x41d   : > { %v1617_v51 = vsel %vm1615_vm3, %v4114_v53, 0 }
 0x4dd   : > { %v1171_v37 = vpop.f32.mrb[40].mxu1 }
 0x4de   : > { %v3826_v39 = vpop.f32.mrb[41].mxu1  ;;  %v1319_v2 = vsel %vm200_vm0, %v1171_v37, -inf }
 0x4df   : > { %v1174_v42 = vpop.f32.mrb[42].mxu1 }
 0x4e0   : > { %v3827_v44 = vpop.f32.mrb[43].mxu1  ;;  %v1322_v3 = vsel %vm200_vm0, %v1174_v42, -inf }
 0x4e5   : > { %v1218_v47 = vpop.f32.mrb[44].mxu1  ;;  %v1265_v49 = vpop.f32.mrb[40].mxu0 }
 0x4e6   : > { %v3832_v58 = vpop.f32.mrb[45].mxu1  ;;  %v1325_v59 = vsel %vm200_vm0, %v1218_v47, -inf  ;;  %v3838_v60 = vpop.f32.mrb[41].mxu0  ;;  %v1331_v14 = vsel %vm200_vm0, %v1265_v49, -inf }
 0x4e7   : > { %1326 = vmax.xlane.f32.xlu0 %v1325_v59  ;;  %v1221_v61 = vpop.f32.mrb[46].mxu1  ;;  %v1268_v62 = vpop.f32.mrb[42].mxu0 }
 0x4e8   : > { %v3833_v63 = vpop.f32.mrb[47].mxu1  ;;  %v1328_v0 = vsel %vm200_vm0, %v1221_v61, -inf  ;;  %v3839_v1 = vpop.f32.mrb[43].mxu0  ;;  %v1334_v16 = vsel %vm200_vm0, %v1268_v62, -inf }
 0x4e9   : > { %1329 = vmax.xlane.f32.xlu1 %v1328_v0 }
 0x4eb   : > { %1320 = vmax.xlane.f32.xlu0 %v1319_v2 }
 0x4ed   : > { %1323 = vmax.xlane.f32.xlu1 %v1322_v3  ;;  %v1312_v4 = vpop.f32.mrb[48].mxu1 }
 0x4ee   : > { %v3844_v6 = vpop.f32.mrb[49].mxu1  ;;  %v1337_v7 = vsel %vm200_vm0, %v1312_v4, -inf }
 0x4ef   : > { %1338 = vmax.xlane.f32.xlu0 %v1337_v7  ;;  %v1315_v8 = vpop.f32.mrb[50].mxu1 }
 0x4f0   : > { %v3845_v11 = vpop.f32.mrb[51].mxu1  ;;  %v1340_v12 = vsel %vm200_vm0, %v1315_v8, -inf }
 0x4f1   : > { %1341 = vmax.xlane.f32.xlu1 %v1340_v12 }
 0x4f3   : > { %1332 = vmax.xlane.f32.xlu0 %v1331_v14 }
 0x4f5   : > { %1335 = vmax.xlane.f32.xlu1 %v1334_v16 }
 0x574   : > { %v1327_v17 = vpop.xlane.xlu0 %1326 }
 0x575   : > { %v1345_v18 = vsub.f32 %v1218_v47, %v1327_v17 }
 0x576   : > { %v1330_v19 = vpop.xlane.xlu1 %1329 }
 0x577   : > { %v1355_v20 = vmul.f32 1.442695, %v1345_v18  ;;  %v1346_v21 = vsub.f32 %v1221_v61, %v1330_v19 }
 0x578   : > { %v1321_v22 = vpop.xlane.xlu0 %1320 }
 0x579   : > { %4154 = vpow2.f32 %v1355_v20  ;;  %v1357_v23 = vmul.f32 1.442695, %v1346_v21  ;;  %v1343_v24 = vsub.f32 %v1171_v37, %v1321_v22 }
 0x57a   : > { %v1324_v25 = vpop.xlane.xlu1 %1323 }
 0x57b   : > { %4156 = vpow2.f32 %v1357_v23  ;;  %v1351_v26 = vmul.f32 1.442695, %v1343_v24  ;;  %v1344_v27 = vsub.f32 %v1174_v42, %v1324_v25 }
 0x57c   : > { %v1339_v28 = vpop.xlane.xlu0 %1338 }
 0x57d   : > { %4158 = vpow2.f32 %v1351_v26  ;;  %v1353_v29 = vmul.f32 1.442695, %v1344_v27  ;;  %v1349_v30 = vsub.f32 %v1312_v4, %v1339_v28 }
 0x57e   : > { %v1342_v31 = vpop.xlane.xlu1 %1341 }
 0x57f   : > { %4160 = vpow2.f32 %v1353_v29  ;;  %v1363_v32 = vmul.f32 1.442695, %v1349_v30  ;;  %v1350_v50 = vsub.f32 %v1315_v8, %v1342_v31  ;;  %v4112_v30 = vld [vmem:[%s4805_s1 + $0x10] sm:$0xff]  }
 0x580   : > { %v1333_v39 = vpop.xlane.xlu0 %1332 }
 0x581   : > { %4162 = vpow2.f32 %v1363_v32  ;;  %v1365_v44 = vmul.f32 1.442695, %v1350_v50  ;;  %v1347_v47 = vsub.f32 %v1265_v49, %v1333_v39 }
 0x582   : > { %v1336_v58 = vpop.xlane.xlu1 %1335 }
 0x583   : > { %v4155_v59 = vpop.eup %4154  ;;  %4164 = vpow2.f32 %v1365_v44  ;;  %v1359_v37 = vmul.f32 1.442695, %v1347_v47  ;;  %v1348_v60 = vsub.f32 %v1268_v62, %v1336_v58 }
 0x584   : > { %v1373_v61 = vsel %vm200_vm0, %v4155_v59, 0.0 }
 0x585   : > { %v4157_v42 = vpop.eup %4156  ;;  %4166 = vpow2.f32 %v1359_v37  ;;  %v1361_v63 = vmul.f32 1.442695, %v1348_v60  ;;  %1374 = vadd.xlane.f32.xlu0 %v1373_v61 }
 0x586   : > { %v1376_v0 = vsel %vm200_vm0, %v4157_v42, 0.0 }
 0x587   : > { %v4159_v1 = vpop.eup %4158  ;;  %4168 = vpow2.f32 %v1361_v63  ;;  %1377 = vadd.xlane.f32.xlu1 %v1376_v0 }
 0x588   : > { %v1367_v2 = vsel %vm200_vm0, %v4159_v1, 0.0 }
 0x589   : > { %v4161_v3 = vpop.eup %4160  ;;  %1368 = vadd.xlane.f32.xlu0 %v1367_v2 }
 0x58a   : > { %v1370_v49 = vsel %vm200_vm0, %v4161_v3, 0.0 }
 0x58b   : > { %v4163_v4 = vpop.eup %4162  ;;  %1371 = vadd.xlane.f32.xlu1 %v1370_v49 }
 0x58c   : > { %v1385_v62 = vsel %vm200_vm0, %v4163_v4, 0.0 }
 0x58d   : > { %v4165_v6 = vpop.eup %4164  ;;  %1386 = vadd.xlane.f32.xlu0 %v1385_v62 }
 0x58e   : > { %v1388_v7 = vsel %vm200_vm0, %v4165_v6, 0.0 }
 0x58f   : > { %v4167_v8 = vpop.eup %4166  ;;  %1389 = vadd.xlane.f32.xlu1 %v1388_v7 }
 0x590   : > { %v1379_v11 = vsel %vm200_vm0, %v4167_v8, 0.0 }
 0x591   : > { %v4169_v12 = vpop.eup %4168  ;;  %1380 = vadd.xlane.f32.xlu0 %v1379_v11 }
 0x592   : > { %v1382_v14 = vsel %vm200_vm0, %v4169_v12, 0.0 }
 0x593   : > { %1383 = vadd.xlane.f32.xlu1 %v1382_v14 }
 0x612   : > { %v1375_v16 = vpop.xlane.xlu0 %1374 }
 0x613   : > { %4170 = vrcp.f32 %v1375_v16 }
 0x614   : > { %v1378_v17 = vpop.xlane.xlu1 %1377 }
 0x615   : > { %4172 = vrcp.f32 %v1378_v17 }
 0x616   : > { %v1369_v18 = vpop.xlane.xlu0 %1368 }
 0x617   : > { %4174 = vrcp.f32 %v1369_v18 }
 0x618   : > { %v1372_v19 = vpop.xlane.xlu1 %1371 }
 0x619   : > { %4176 = vrcp.f32 %v1372_v19 }
 0x61a   : > { %v1387_v20 = vpop.xlane.xlu0 %1386 }
 0x61b   : > { %4178 = vrcp.f32 %v1387_v20 }
 0x61c   : > { %v1390_v21 = vpop.xlane.xlu1 %1389 }
 0x61d   : > { %v4171_v22 = vpop.eup %4170  ;;  %4180 = vrcp.f32 %v1390_v21 }
 0x61e   : > { %v1381_v23 = vpop.xlane.xlu0 %1380  ;;  %v1401_v25 = vmul.f32 %v4171_v22, %v4155_v59 }
 0x61f   : > { %v4173_v24 = vpop.eup %4172  ;;  %4182 = vrcp.f32 %v1381_v23 }
 0x620   : > { %v1402_v26 = vmul.f32 %v4173_v24, %v4157_v42  ;;  %v1384_v27 = vpop.xlane.xlu1 %1383 }
 0x621   : > { %v4175_v28 = vpop.eup %4174  ;;  %4184 = vrcp.f32 %v1384_v27 }
 0x622   : > { %v1408_v29 = vpack.c.bf16 %v1402_v26, %v1401_v25  ;;  %v1399_v32 = vmul.f32 %v4175_v28, %v4159_v1 }
 0x623   : > { %v4177_v31 = vpop.eup %4176 }
 0x624   : > { %v1400_v50 = vmul.f32 %v4177_v31, %v4161_v3  ;;  %3855 = vmatmul.mubr.msk.bf16.vlgmr.msra.gmra.mrb[52].mxu1 %vm200_vm0, %v1408_v29 }
 0x625   : > { %v4179_v39 = vpop.eup %4178  ;;  %3865 = vmatpush3.bf16.msra.mxu1 %v1414_v34  ;;  %3866 = vmatprep.mubr.msk.bf16.mxu1 %vm4259_vm1, %v4258_v15 }
 0x626   : > { %v1407_v44 = vpack.c.bf16 %v1400_v50, %v1399_v32  ;;  %3890 = vmatprep.subr.bf16.mxu1 %v4112_v30  ;;  %v1405_v58 = vmul.f32 %v4179_v39, %v4163_v4 }
 0x627   : > { %v4181_v47 = vpop.eup %4180 }
 0x628   : > { %v1406_v59 = vmul.f32 %v4181_v47, %v4165_v6  ;;  %3849 = vmatmul.mubr.msk.bf16.vlgmr.msra.gmra.mrb[44].mxu0 %vm200_vm0, %v1407_v44 }
 0x629   : > { %v4183_v37 = vpop.eup %4182  ;;  %3859 = vmatpush3.bf16.msra.mxu0 %v1413_v55  ;;  %3860 = vmatprep.mubr.msk.bf16.mxu0 %vm4259_vm1, %v4258_v15  ;;  %v4115_v55 = vld [vmem:[%s4806_s2] sm:$0x3f]  }
 0x62a   : > { %v1410_v52 = vpack.c.bf16 %v1406_v59, %v1405_v58  ;;  %v1403_v60 = vmul.f32 %v4183_v37, %v4167_v8  ;;  %4092 = vmatprep.subr.msk.bf16.mxu0 %vm1615_vm3, %v4114_v53  ;;  %v1702_v11 = vsel %vm1615_vm3, %v4115_v55, 0 }
 0x62b   : > { %v4185_v34 = vpop.eup %4184 }
 0x62c   : > { %v1404_v61 = vmul.f32 %v4185_v34, %v4169_v12  ;;  %3867 = vmatmul.mubr.msk.bf16.vlgmr.msra.gmra.mrb[56].mxu1 %vm200_vm0, %v1410_v52  ;;  %v4116_v12 = vld [vmem:[%s4805_s1 + $0x50] sm:$0xff]  }
 0x62d   : > { %3891 = vmatpush3.bf16.msra.mxu1 %v4112_v30  ;;  %3892 = vmatprep.mubr.msk.bf16.mxu1 %vm200_vm0, %v4306_v10 }
 0x62e   : > { %v1409_v42 = vpack.c.bf16 %v1404_v61, %v1403_v60  ;;  %3900 = vmatprep.subr.bf16.mxu1 %v4113_v33 }
 0x630   : > { %3861 = vmatmul.mubr.msk.bf16.vlgmr.msra.gmra.mrb[48].mxu0 %vm200_vm0, %v1409_v42 }
 0x631   : > { %3871 = vmatpush3.bf16.msra.mxu0 %v1617_v51 }
 0x632   : > { %4093 = vmatprep.subr.msk.bf16.mxu0 %vm1615_vm3, %v4115_v55 }
 0x634   : > { %3893 = vmatmul.mubr.msk.bf16.vlgmr.msra.gmra.mrb[60].mxu1 %vm200_vm0, %v4312_v13 }
 0x635   : > { %3896 = vmatprep.mubr.msk.bf16.mxu1 %vm200_vm0, %v4302_v5  ;;  %3901 = vmatpush3.bf16.msra.mxu1 %v4113_v33 }
 0x636   : > { %3920 = vmatprep.subr.bf16.mxu1 %v4258_v15 }
 0x63c   : > { %3897 = vmatmul.mubr.msk.bf16.gmra.mrb[64].mxu1 %vm200_vm0, %v4304_v9 }
 0x63d   : > { %3902 = vmatprep.mubr.msk.bf16.mxu1 %vm200_vm0, %v4306_v10 }
 0x644   : > { %3903 = vmatmul.mubr.msk.bf16.vlgmr.msra.gmra.mrb[68].mxu1 %vm200_vm0, %v4312_v13 }
 0x645   : > { %3906 = vmatprep.mubr.msk.bf16.mxu1 %vm200_vm0, %v4302_v5 }
 0x64c   : > { %3907 = vmatmul.mubr.msk.bf16.gmra.mrb[72].mxu1 %vm200_vm0, %v4304_v9 }
 0x64d   : > { %3922 = vmatprep.mubr.msk.bf16.mxu1 %vm4259_vm1, %v4258_v15 }
 0x6f7   : > { %v1496_v63 = vpop.f32.mrb[52].mxu1 }
 0x6f8   : > { %v3856_v0 = vpop.f32.mrb[53].mxu1 }
 0x6f9   : > { %v1499_v1 = vpop.f32.mrb[54].mxu1 }
 0x6fa   : > { %v1592_v2 = vpack.c.bf16 %v1499_v1, %v1496_v63  ;;  %v3857_v3 = vpop.f32.mrb[55].mxu1 }
 0x6fb   : > { %v1452_v49 = vpop.f32.mrb[44].mxu0 }
 0x6fc   : > { %v3850_v4 = vpop.f32.mrb[45].mxu0 }
 0x6fd   : > { %v1455_v62 = vpop.f32.mrb[46].mxu0 }
 0x6fe   : > { %v1591_v6 = vpack.c.bf16 %v1455_v62, %v1452_v49  ;;  %v3851_v7 = vpop.f32.mrb[47].mxu0 }
 0x6ff   : > { %v1584_v8 = vpop.f32.mrb[56].mxu1 }
 0x700   : > { %v3868_v14 = vpop.f32.mrb[57].mxu1  ;;  %3872 = vmatprep.mubr.msk.bf16.mxu0 %vm434_vm2, %v1591_v6 }
 0x701   : > { %v1587_v16 = vpop.f32.mrb[58].mxu1  ;;  %3873 = vmatmul.mubr.msk.bf16.vlgmr.msra.gmra.mrb[52].mxu0 %vm434_vm2, %v1592_v2 }
 0x702   : > { %v1594_v17 = vpack.c.bf16 %v1587_v16, %v1584_v8  ;;  %v3869_v18 = vpop.f32.mrb[59].mxu1  ;;  %3881 = vmatpush3.bf16.msra.mxu0 %v1702_v11 }
 0x703   : > { %v1540_v19 = vpop.f32.mrb[48].mxu0  ;;  %3910 = vmatprep.subr.bf16.mxu0 %v4116_v12 }
 0x704   : > { %v3862_v20 = vpop.f32.mrb[49].mxu0 }
 0x705   : > { %v1543_v21 = vpop.f32.mrb[50].mxu0 }
 0x706   : > { %v1593_v22 = vpack.c.bf16 %v1543_v21, %v1540_v19  ;;  %v3863_v23 = vpop.f32.mrb[51].mxu0 }
 0x707   : > { %v3894_v24 = vpop.f32.mrb[60].mxu1 }
 0x708   : > { %3876 = vmatprep.mubr.msk.bf16.mxu0 %vm434_vm2, %v1593_v22  ;;  %v1812_v25 = vpop.f32.mrb[61].mxu1 }
 0x709   : > { %3877 = vmatmul.mubr.msk.bf16.gmra.mrb[56].mxu0 %vm434_vm2, %v1594_v17  ;;  %v3895_v26 = vpop.f32.mrb[62].mxu1 }
 0x70a   : > { %v1992_v27 = vpack.c.bf16 %v3895_v26, %v3894_v24  ;;  %3882 = vmatprep.mubr.msk.bf16.mxu0 %vm434_vm2, %v895_v41  ;;  %v1815_v28 = vpop.f32.mrb[63].mxu1 }
 0x70b   : > { %v1991_v29 = vpack.c.bf16 %v1815_v28, %v1812_v25 }
 0x70f   : > { %v3898_v30 = vpop.f32.mrb[64].mxu1 }
 0x710   : > { %v1828_v31 = vpop.f32.mrb[65].mxu1 }
 0x711   : > { %3883 = vmatmul.mubr.msk.bf16.vlgmr.msra.gmra.mrb[52].mxu0 %vm434_vm2, %v896_v36  ;;  %v3899_v32 = vpop.f32.mrb[66].mxu1 }
 0x712   : > { %v1994_v50 = vpack.c.bf16 %v3899_v32, %v3898_v30  ;;  %3886 = vmatprep.mubr.msk.bf16.mxu0 %vm434_vm2, %v897_v57  ;;  %v1831_v39 = vpop.f32.mrb[67].mxu1  ;;  %3911 = vmatpush3.bf16.msra.mxu0 %v4116_v12 }
 0x713   : > { %v1993_v38 = vpack.c.bf16 %v1831_v39, %v1828_v31  ;;  %3932 = vmatprep.subr.bf16.mxu0 %v4258_v15 }
 0x717   : > { %v3904_v40 = vpop.f32.mrb[68].mxu1 }
 0x718   : > { %v1886_v41 = vpop.f32.mrb[69].mxu1 }
 0x719   : > { %3887 = vmatmul.mubr.msk.bf16.gmra.mrb[56].mxu0 %vm434_vm2, %v898_v46  ;;  %v3905_v54 = vpop.f32.mrb[70].mxu1 }
 0x71a   : > { %v1996_v35 = vpack.c.bf16 %v3905_v54, %v3904_v40  ;;  %v1889_v36 = vpop.f32.mrb[71].mxu1  ;;  %3912 = vmatprep.mubr.msk.bf16.mxu0 %vm200_vm0, %v4306_v10 }
 0x71b   : > { %v1995_v48 = vpack.c.bf16 %v1889_v36, %v1886_v41 }
 0x71c   : > { %v2050_v58 = vsel %vm434_vm2, %v1996_v35, 0 }
 0x71d   : > { %v2003_v56 = vsel %vm434_vm2, %v1995_v48, 0 }
 0x71e   : > { %3921 = vmatpush3.bf16.xpose.msra.mxu1 %v2003_v56 }
 0x71f   : > { %v3908_v57 = vpop.f32.mrb[72].mxu1  ;;  %3926 = vmatprep.subr.bf16.mxu1 %v4258_v15 }
 0x720   : > { %v1902_v44 = vpop.f32.mrb[73].mxu1 }
 0x721   : > { %3913 = vmatmul.mubr.msk.bf16.vlgmr.msra.gmra.mrb[60].mxu0 %vm200_vm0, %v4312_v13  ;;  %v3909_v43 = vpop.f32.mrb[74].mxu1 }
 0x722   : > { %v1998_v45 = vpack.c.bf16 %v3909_v43, %v3908_v57  ;;  %v1905_v46 = vpop.f32.mrb[75].mxu1  ;;  %3916 = vmatprep.mubr.msk.bf16.mxu0 %vm200_vm0, %v4302_v5 }
 0x723   : > { %v1997_v47 = vpack.c.bf16 %v1905_v46, %v1902_v44 }
 0x724   : > { %v2144_v37 = vsel %vm434_vm2, %v1998_v45, 0 }
 0x725   : > { %v2097_v59 = vsel %vm434_vm2, %v1997_v47, 0  ;;  %3923 = vmatmul.mubr.msk.bf16.vlgmr.msra.gmra.mrb[76].mxu1 %vm434_vm2, %v1991_v29 }
 0x726   : > { %3927 = vmatpush3.bf16.xpose.msra.mxu1 %v2050_v58  ;;  %3933 = vmatpush3.bf16.xpose.msra.mxu0 %v2097_v59 }
 0x727   : > { %3928 = vmatprep.mubr.msk.bf16.mxu1 %vm4259_vm1, %v4258_v15  ;;  %3938 = vmatprep.subr.bf16.mxu1 %v4258_v15 }
 0x728   : > { %3944 = vmatprep.subr.bf16.mxu0 %v4258_v15 }
 0x729   : > { %3917 = vmatmul.mubr.msk.bf16.gmra.mrb[64].mxu0 %vm200_vm0, %v4304_v9 }
 0x72a   : > { %3934 = vmatprep.mubr.msk.bf16.mxu0 %vm4259_vm1, %v4258_v15 }
 0x72d   : > { %3929 = vmatmul.mubr.msk.bf16.vlgmr.msra.gmra.mrb[80].mxu1 %vm434_vm2, %v1992_v27 }
 0x72e   : > { %3939 = vmatpush3.bf16.xpose.msra.mxu1 %v2144_v37  ;;  %3940 = vmatprep.mubr.msk.bf16.mxu1 %vm4259_vm1, %v4258_v15 }
 0x72f   : > { %3950 = vmatprep.subr.bf16.mxu1 %v4258_v15 }
 0x731   : > { %3935 = vmatmul.mubr.msk.bf16.vlgmr.msra.gmra.mrb[68].mxu0 %vm434_vm2, %v1993_v38 }
 0x732   : > { %3946 = vmatprep.mubr.msk.bf16.mxu0 %vm4259_vm1, %v4258_v15 }
 0x735   : > { %3941 = vmatmul.mubr.msk.bf16.vlgmr.msra.gmra.mrb[84].mxu1 %vm434_vm2, %v1994_v50 }
 0x736   : > { %3952 = vmatprep.mubr.msk.bf16.mxu1 %vm4259_vm1, %v4258_v15 }
 0x7f4   : > { %v3914_v52 = vpop.f32.mrb[60].mxu0 }
 0x7f5   : > { %v1960_v33 = vpop.f32.mrb[61].mxu0 }
 0x7f6   : > { %v3915_v34 = vpop.f32.mrb[62].mxu0 }
 0x7f7   : > { %v2280_v60 = vpack.c.bf16 %v3915_v34, %v3914_v52  ;;  %v1963_v61 = vpop.f32.mrb[63].mxu0 }
 0x7f8   : > { %v2279_v42 = vpack.c.bf16 %v1963_v61, %v1960_v33  ;;  %v2039_v53 = vpop.f32.mrb[76].mxu1 }
 0x7f9   : > { %v3924_v51 = vpop.f32.mrb[77].mxu1  ;;  %3951 = vmatpush3.bf16.msra.mxu1 %v2280_v60  ;;  %v2187_v55 = vsel %vm200_vm0, %v2039_v53, -inf }
 0x7fa   : > { %2188 = vmax.xlane.f32.xlu0 %v2187_v55  ;;  %v2042_v63 = vpop.f32.mrb[78].mxu1  ;;  %3945 = vmatpush3.bf16.msra.mxu0 %v2279_v42 }
 0x7fb   : > { %v3925_v0 = vpop.f32.mrb[79].mxu1  ;;  %v2190_v1 = vsel %vm200_vm0, %v2042_v63, -inf  ;;  %3956 = vmatprep.subr.bf16.mxu0 %v4258_v15  ;;  %3962 = vmatprep.subr.bf16.mxu1 %v4258_v15 }
 0x7fc   : > { %2191 = vmax.xlane.f32.xlu1 %v2190_v1  ;;  %v4627_v2 = vpop.f32.mrb[64].mxu0 }
 0x7fd   : > { %v4629_v3 = vpop.f32.mrb[65].mxu0 }
 0x7fe   : > { %v4631_v49 = vpop.f32.mrb[66].mxu0 }
 0x7ff   : > { %v2282_v4 = vpack.c.bf16 %v4631_v49, %v4627_v2  ;;  %v4635_v62 = vpop.f32.mrb[67].mxu0  ;;  %v4117_v2 = vld [vmem:[%s4806_s2 + $0x10] sm:$0x3f]  }
 0x800   : > { %v2281_v6 = vpack.c.bf16 %v4635_v62, %v4629_v3  ;;  %v2086_v7 = vpop.f32.mrb[80].mxu1  ;;  %v2484_v49 = vsel %vm1615_vm3, %v4117_v2, 0 }
 0x801   : > { %v3930_v8 = vpop.f32.mrb[81].mxu1  ;;  %v2193_v11 = vsel %vm200_vm0, %v2086_v7, -inf }
 0x802   : > { %2194 = vmax.xlane.f32.xlu0 %v2193_v11  ;;  %v2089_v12 = vpop.f32.mrb[82].mxu1 }
 0x803   : > { %v3931_v14 = vpop.f32.mrb[83].mxu1  ;;  %v2196_v16 = vsel %vm200_vm0, %v2089_v12, -inf }
 0x804   : > { %2197 = vmax.xlane.f32.xlu1 %v2196_v16  ;;  %v2133_v17 = vpop.f32.mrb[68].mxu0 }
 0x805   : > { %v3936_v18 = vpop.f32.mrb[69].mxu0  ;;  %v2199_v19 = vsel %vm200_vm0, %v2133_v17, -inf }
 0x806   : > { %2200 = vmax.xlane.f32.xlu0 %v2199_v19  ;;  %v2136_v20 = vpop.f32.mrb[70].mxu0 }
 0x807   : > { %v3937_v21 = vpop.f32.mrb[71].mxu0  ;;  %v2202_v22 = vsel %vm200_vm0, %v2136_v20, -inf }
 0x808   : > { %v2180_v23 = vpop.f32.mrb[84].mxu1  ;;  %2203 = vmax.xlane.f32.xlu1 %v2202_v22 }
 0x809   : > { %v3942_v24 = vpop.f32.mrb[85].mxu1  ;;  %v2205_v25 = vsel %vm200_vm0, %v2180_v23, -inf }
 0x80a   : > { %v2183_v26 = vpop.f32.mrb[86].mxu1  ;;  %2206 = vmax.xlane.f32.xlu0 %v2205_v25 }
 0x80b   : > { %v3943_v27 = vpop.f32.mrb[87].mxu1  ;;  %v2208_v28 = vsel %vm200_vm0, %v2183_v26, -inf }
 0x80c   : > { %2209 = vmax.xlane.f32.xlu1 %v2208_v28 }
 0x887   : > { %v2189_v29 = vpop.xlane.xlu0 %2188 }
 0x888   : > { %v2211_v30 = vsub.f32 %v2039_v53, %v2189_v29 }
 0x889   : > { %v2192_v31 = vpop.xlane.xlu1 %2191 }
 0x88a   : > { %v2219_v32 = vmul.f32 1.442695, %v2211_v30  ;;  %v2212_v50 = vsub.f32 %v2042_v63, %v2192_v31 }
 0x88c   : > { %4186 = vpow2.f32 %v2219_v32  ;;  %v2221_v39 = vmul.f32 1.442695, %v2212_v50 }
 0x88e   : > { %4188 = vpow2.f32 %v2221_v39 }
 0x88f   : > { %v2195_v38 = vpop.xlane.xlu0 %2194 }
 0x890   : > { %v2213_v40 = vsub.f32 %v2086_v7, %v2195_v38 }
 0x891   : > { %v2198_v41 = vpop.xlane.xlu1 %2197 }
 0x892   : > { %v2223_v54 = vmul.f32 1.442695, %v2213_v40  ;;  %v2214_v35 = vsub.f32 %v2089_v12, %v2198_v41 }
 0x893   : > { %v2201_v36 = vpop.xlane.xlu0 %2200 }
 0x894   : > { %4190 = vpow2.f32 %v2223_v54  ;;  %v2225_v48 = vmul.f32 1.442695, %v2214_v35  ;;  %v2215_v56 = vsub.f32 %v2133_v17, %v2201_v36 }
 0x895   : > { %v2204_v57 = vpop.xlane.xlu1 %2203 }
 0x896   : > { %v4187_v44 = vpop.eup %4186  ;;  %4192 = vpow2.f32 %v2225_v48  ;;  %v2227_v43 = vmul.f32 1.442695, %v2215_v56  ;;  %v2216_v45 = vsub.f32 %v2136_v20, %v2204_v57  ;;  %v4119_v48 = vld [vmem:[%s4805_s1 + $0x18] sm:$0xff]  }
 0x897   : > { %v2207_v46 = vpop.xlane.xlu0 %2206  ;;  %v2235_v47 = vsel %vm200_vm0, %v4187_v44, 0.0  ;;  %v4120_v56 = vld [vmem:[%s4805_s1 + $0x58] sm:$0xff]  }
 0x898   : > { %v4189_v58 = vpop.eup %4188  ;;  %4194 = vpow2.f32 %v2227_v43  ;;  %v2229_v59 = vmul.f32 1.442695, %v2216_v45  ;;  %v2217_v37 = vsub.f32 %v2180_v23, %v2207_v46  ;;  %2236 = vadd.xlane.f32.xlu0 %v2235_v47 }
 0x899   : > { %v2210_v52 = vpop.xlane.xlu1 %2209  ;;  %v2238_v33 = vsel %vm200_vm0, %v4189_v58, 0.0 }
 0x89a   : > { %4196 = vpow2.f32 %v2229_v59  ;;  %v2231_v34 = vmul.f32 1.442695, %v2217_v37  ;;  %v2218_v60 = vsub.f32 %v2183_v26, %v2210_v52  ;;  %2239 = vadd.xlane.f32.xlu1 %v2238_v33 }
 0x89c   : > { %4198 = vpow2.f32 %v2231_v34  ;;  %v2233_v61 = vmul.f32 1.442695, %v2218_v60 }
 0x89e   : > { %v4191_v42 = vpop.eup %4190  ;;  %4200 = vpow2.f32 %v2233_v61 }
 0x89f   : > { %v2241_v53 = vsel %vm200_vm0, %v4191_v42, 0.0 }
 0x8a0   : > { %v4193_v51 = vpop.eup %4192  ;;  %2242 = vadd.xlane.f32.xlu0 %v2241_v53 }
 0x8a1   : > { %v2244_v55 = vsel %vm200_vm0, %v4193_v51, 0.0 }
 0x8a2   : > { %v4195_v63 = vpop.eup %4194  ;;  %2245 = vadd.xlane.f32.xlu1 %v2244_v55 }
 0x8a3   : > { %v2247_v0 = vsel %vm200_vm0, %v4195_v63, 0.0 }
 0x8a4   : > { %v4197_v1 = vpop.eup %4196  ;;  %2248 = vadd.xlane.f32.xlu0 %v2247_v0 }
 0x8a5   : > { %v2250_v7 = vsel %vm200_vm0, %v4197_v1, 0.0 }
 0x8a6   : > { %v4199_v8 = vpop.eup %4198  ;;  %2251 = vadd.xlane.f32.xlu1 %v2250_v7 }
 0x8a7   : > { %v2253_v11 = vsel %vm200_vm0, %v4199_v8, 0.0 }
 0x8a8   : > { %v4201_v12 = vpop.eup %4200  ;;  %2254 = vadd.xlane.f32.xlu0 %v2253_v11 }
 0x8a9   : > { %v2256_v14 = vsel %vm200_vm0, %v4201_v12, 0.0 }
 0x8aa   : > { %2257 = vadd.xlane.f32.xlu1 %v2256_v14 }
 0x925   : > { %v2237_v16 = vpop.xlane.xlu0 %2236 }
 0x926   : > { %4202 = vrcp.f32 %v2237_v16 }
 0x927   : > { %v2240_v17 = vpop.xlane.xlu1 %2239 }
 0x928   : > { %4204 = vrcp.f32 %v2240_v17 }
 0x92d   : > { %v2243_v18 = vpop.xlane.xlu0 %2242 }
 0x92e   : > { %4206 = vrcp.f32 %v2243_v18 }
 0x92f   : > { %v2246_v19 = vpop.xlane.xlu1 %2245 }
 0x930   : > { %v4203_v20 = vpop.eup %4202  ;;  %4208 = vrcp.f32 %v2246_v19 }
 0x931   : > { %v2249_v21 = vpop.xlane.xlu0 %2248  ;;  %v2267_v23 = vmul.f32 %v4203_v20, %v4187_v44 }
 0x932   : > { %v4205_v22 = vpop.eup %4204  ;;  %4210 = vrcp.f32 %v2249_v21 }
 0x933   : > { %v2268_v24 = vmul.f32 %v4205_v22, %v4189_v58  ;;  %v2252_v25 = vpop.xlane.xlu1 %2251 }
 0x934   : > { %4212 = vrcp.f32 %v2252_v25 }
 0x935   : > { %v2255_v26 = vpop.xlane.xlu0 %2254  ;;  %v2275_v27 = vpack.c.bf16 %v2268_v24, %v2267_v23 }
 0x936   : > { %4214 = vrcp.f32 %v2255_v26 }
 0x937   : > { %3947 = vmatmul.mubr.msk.bf16.vlgmr.msra.gmra.mrb[72].mxu0 %vm200_vm0, %v2275_v27  ;;  %v2258_v28 = vpop.xlane.xlu1 %2257 }
 0x938   : > { %v4207_v29 = vpop.eup %4206  ;;  %3957 = vmatpush3.bf16.msra.mxu0 %v2281_v6  ;;  %4216 = vrcp.f32 %v2258_v28  ;;  %3958 = vmatprep.mubr.msk.bf16.mxu0 %vm4259_vm1, %v4258_v15 }
 0x939   : > { %v2269_v31 = vmul.f32 %v4207_v29, %v4191_v42  ;;  %4094 = vmatprep.subr.msk.bf16.mxu0 %vm1615_vm3, %v4117_v2 }
 0x93a   : > { %v4209_v30 = vpop.eup %4208 }
 0x93b   : > { %v2270_v32 = vmul.f32 %v4209_v30, %v4193_v51 }
 0x93c   : > { %v4211_v50 = vpop.eup %4210 }
 0x93d   : > { %v2276_v39 = vpack.c.bf16 %v2270_v32, %v2269_v31  ;;  %v2271_v40 = vmul.f32 %v4211_v50, %v4195_v63 }
 0x93e   : > { %v4213_v38 = vpop.eup %4212 }
 0x93f   : > { %v2272_v41 = vmul.f32 %v4213_v38, %v4197_v1  ;;  %3953 = vmatmul.mubr.msk.bf16.vlgmr.msra.gmra.mrb[88].mxu1 %vm200_vm0, %v2276_v39 }
 0x940   : > { %v4215_v54 = vpop.eup %4214  ;;  %3963 = vmatpush3.bf16.msra.mxu1 %v2282_v4  ;;  %3964 = vmatprep.mubr.msk.bf16.mxu1 %vm4259_vm1, %v4258_v15  ;;  %v4118_v4 = vld [vmem:[%s4805_s1 + $0x38] sm:$0xff]  }
 0x941   : > { %v2277_v3 = vpack.c.bf16 %v2272_v41, %v2271_v40  ;;  %v2273_v6 = vmul.f32 %v4215_v54, %v4199_v8  ;;  %3978 = vmatprep.subr.bf16.mxu1 %v4119_v48 }
 0x942   : > { %v4217_v62 = vpop.eup %4216 }
 0x943   : > { %v2274_v35 = vmul.f32 %v4217_v62, %v4201_v12  ;;  %3959 = vmatmul.mubr.msk.bf16.vlgmr.msra.gmra.mrb[76].mxu0 %vm200_vm0, %v2277_v3 }
 0x944   : > { %3969 = vmatpush3.bf16.msra.mxu0 %v2484_v49 }
 0x945   : > { %v2278_v36 = vpack.c.bf16 %v2274_v35, %v2273_v6  ;;  %3988 = vmatprep.subr.bf16.mxu0 %v4118_v4 }
 0x947   : > { %3965 = vmatmul.mubr.msk.bf16.vlgmr.msra.gmra.mrb[92].mxu1 %vm200_vm0, %v2278_v36 }
 0x948   : > { %3980 = vmatprep.mubr.msk.bf16.mxu1 %vm200_vm0, %v4306_v10  ;;  %3979 = vmatpush3.bf16.msra.mxu1 %v4119_v48 }
 0x949   : > { %3998 = vmatprep.subr.bf16.mxu1 %v4120_v56 }
 0x94f   : > { %3981 = vmatmul.mubr.msk.bf16.vlgmr.msra.gmra.mrb[96].mxu1 %vm200_vm0, %v4312_v13 }
 0x950   : > { %3984 = vmatprep.mubr.msk.bf16.mxu1 %vm200_vm0, %v4302_v5  ;;  %3999 = vmatpush3.bf16.msra.mxu1 %v4120_v56 }
 0x951   : > { %4014 = vmatprep.subr.bf16.mxu1 %v4258_v15 }
 0x957   : > { %3985 = vmatmul.mubr.msk.bf16.gmra.mrb[100].mxu1 %vm200_vm0, %v4304_v9 }
 0x958   : > { %4000 = vmatprep.mubr.msk.bf16.mxu1 %vm200_vm0, %v4306_v10 }
 0x95f   : > { %4001 = vmatmul.mubr.msk.bf16.vlgmr.msra.gmra.mrb[104].mxu1 %vm200_vm0, %v4312_v13 }
 0x960   : > { %4004 = vmatprep.mubr.msk.bf16.mxu1 %vm200_vm0, %v4302_v5 }
 0x967   : > { %4005 = vmatmul.mubr.msk.bf16.gmra.mrb[108].mxu1 %vm200_vm0, %v4304_v9 }
 0x968   : > { %4016 = vmatprep.mubr.msk.bf16.mxu1 %vm4259_vm1, %v4258_v15 }
 0xa0a   : > { %v2320_v57 = vpop.f32.mrb[72].mxu0 }
 0xa0b   : > { %v3948_v44 = vpop.f32.mrb[73].mxu0 }
 0xa0c   : > { %v2323_v43 = vpop.f32.mrb[74].mxu0 }
 0xa0d   : > { %v2459_v45 = vpack.c.bf16 %v2323_v43, %v2320_v57  ;;  %v3949_v46 = vpop.f32.mrb[75].mxu0 }
 0xa0f   : > { %3970 = vmatprep.mubr.msk.bf16.mxu0 %vm434_vm2, %v2459_v45 }
 0xa12   : > { %v2364_v47 = vpop.f32.mrb[88].mxu1 }
 0xa13   : > { %v3954_v58 = vpop.f32.mrb[89].mxu1 }
 0xa14   : > { %v2367_v59 = vpop.f32.mrb[90].mxu1 }
 0xa15   : > { %v2460_v37 = vpack.c.bf16 %v2367_v59, %v2364_v47  ;;  %v3955_v52 = vpop.f32.mrb[91].mxu1 }
 0xa16   : > { %v2408_v33 = vpop.f32.mrb[76].mxu0 }
 0xa17   : > { %v3960_v34 = vpop.f32.mrb[77].mxu0  ;;  %3971 = vmatmul.mubr.msk.bf16.vlgmr.msra.gmra.mrb[52].mxu0 %vm434_vm2, %v2460_v37 }
 0xa18   : > { %v2411_v60 = vpop.f32.mrb[78].mxu0  ;;  %3989 = vmatpush3.bf16.msra.mxu0 %v4118_v4 }
 0xa19   : > { %v2461_v61 = vpack.c.bf16 %v2411_v60, %v2408_v33  ;;  %v3961_v42 = vpop.f32.mrb[79].mxu0  ;;  %4008 = vmatprep.subr.bf16.mxu0 %v4258_v15 }
 0xa1a   : > { %v2452_v53 = vpop.f32.mrb[92].mxu1 }
 0xa1b   : > { %v3966_v51 = vpop.f32.mrb[93].mxu1  ;;  %3974 = vmatprep.mubr.msk.bf16.mxu0 %vm434_vm2, %v2461_v61 }
 0xa1c   : > { %v2455_v55 = vpop.f32.mrb[94].mxu1 }
 0xa1d   : > { %v2462_v63 = vpack.c.bf16 %v2455_v55, %v2452_v53  ;;  %v3967_v0 = vpop.f32.mrb[95].mxu1 }
 0xa1f   : > { %3975 = vmatmul.mubr.msk.bf16.gmra.mrb[56].mxu0 %vm434_vm2, %v2462_v63 }
 0xa20   : > { %3990 = vmatprep.mubr.msk.bf16.mxu0 %vm200_vm0, %v4306_v10 }
 0xa22   : > { %v3982_v1 = vpop.f32.mrb[96].mxu1 }
 0xa23   : > { %v2602_v7 = vpop.f32.mrb[97].mxu1 }
 0xa24   : > { %v3983_v8 = vpop.f32.mrb[98].mxu1 }
 0xa25   : > { %v2782_v11 = vpack.c.bf16 %v3983_v8, %v3982_v1  ;;  %v2605_v12 = vpop.f32.mrb[99].mxu1 }
 0xa26   : > { %v2781_v14 = vpack.c.bf16 %v2605_v12, %v2602_v7 }
 0xa27   : > { %3991 = vmatmul.mubr.msk.bf16.vlgmr.msra.gmra.mrb[80].mxu0 %vm200_vm0, %v4312_v13 }
 0xa28   : > { %3994 = vmatprep.mubr.msk.bf16.mxu0 %vm200_vm0, %v4302_v5 }
 0xa2a   : > { %v3986_v16 = vpop.f32.mrb[100].mxu1 }
 0xa2b   : > { %v2618_v10 = vpop.f32.mrb[101].mxu1 }
 0xa2c   : > { %v3987_v17 = vpop.f32.mrb[102].mxu1 }
 0xa2d   : > { %v2784_v18 = vpack.c.bf16 %v3987_v17, %v3986_v16  ;;  %v2621_v13 = vpop.f32.mrb[103].mxu1 }
 0xa2e   : > { %v2783_v19 = vpack.c.bf16 %v2621_v13, %v2618_v10 }
 0xa2f   : > { %3995 = vmatmul.mubr.msk.bf16.gmra.mrb[84].mxu0 %vm200_vm0, %v4304_v9 }
 0xa30   : > { %4010 = vmatprep.mubr.msk.bf16.mxu0 %vm4259_vm1, %v4258_v15 }
 0xa32   : > { %v4002_v20 = vpop.f32.mrb[104].mxu1 }
 0xa33   : > { %v2750_v5 = vpop.f32.mrb[105].mxu1 }
 0xa34   : > { %v4003_v21 = vpop.f32.mrb[106].mxu1 }
 0xa35   : > { %v3070_v22 = vpack.c.bf16 %v4003_v21, %v4002_v20  ;;  %v2753_v9 = vpop.f32.mrb[107].mxu1 }
 0xa36   : > { %v3069_v23 = vpack.c.bf16 %v2753_v9, %v2750_v5 }
 0xa3a   : > { %v4715_v24 = vpop.f32.mrb[108].mxu1 }
 0xa3b   : > { %v4717_v25 = vpop.f32.mrb[109].mxu1 }
 0xa3c   : > { %v4741_v35 = vpop.f32.mrb[110].mxu1 }
 0xa3d   : > { %v4743_v36 = vpop.f32.mrb[111].mxu1  ;;  %v3072_v2 = vpack.c.bf16 %v4741_v35, %v4715_v24 }
 0xa3e   : > { %v3071_v49 = vpack.c.bf16 %v4743_v36, %v4717_v25 }
 0xafa   : > { %v3992_v26 = vpop.f32.mrb[80].mxu0 }
 0xafb   : > { %v2676_v27 = vpop.f32.mrb[81].mxu0 }
 0xafc   : > { %v3993_v28 = vpop.f32.mrb[82].mxu0 }
 0xafd   : > { %v2786_v29 = vpack.c.bf16 %v3993_v28, %v3992_v26  ;;  %v2679_v30 = vpop.f32.mrb[83].mxu0 }
 0xafe   : > { %v2785_v31 = vpack.c.bf16 %v2679_v30, %v2676_v27 }
 0xaff   : > { %v2840_v32 = vsel %vm434_vm2, %v2786_v29, 0 }
 0xb00   : > { %v2793_v50 = vsel %vm434_vm2, %v2785_v31, 0  ;;  %4015 = vmatpush3.bf16.xpose.msra.mxu1 %v2840_v32 }
 0xb01   : > { %4009 = vmatpush3.bf16.xpose.msra.mxu0 %v2793_v50  ;;  %4026 = vmatprep.subr.bf16.mxu1 %v4258_v15 }
 0xb02   : > { %v3996_v39 = vpop.f32.mrb[84].mxu0  ;;  %4020 = vmatprep.subr.bf16.mxu0 %v4258_v15 }
 0xb03   : > { %v2692_v38 = vpop.f32.mrb[85].mxu0 }
 0xb04   : > { %v3997_v40 = vpop.f32.mrb[86].mxu0 }
 0xb05   : > { %v2788_v41 = vpack.c.bf16 %v3997_v40, %v3996_v39  ;;  %v2695_v54 = vpop.f32.mrb[87].mxu0 }
 0xb06   : > { %v2787_v3 = vpack.c.bf16 %v2695_v54, %v2692_v38 }
 0xb07   : > { %v2934_v62 = vsel %vm434_vm2, %v2788_v41, 0  ;;  %4017 = vmatmul.mubr.msk.bf16.vlgmr.msra.gmra.mrb[112].mxu1 %vm434_vm2, %v2782_v11 }
 0xb08   : > { %v2887_v6 = vsel %vm434_vm2, %v2787_v3, 0  ;;  %4011 = vmatmul.mubr.msk.bf16.vlgmr.msra.gmra.mrb[88].mxu0 %vm434_vm2, %v2781_v14  ;;  %4027 = vmatpush3.bf16.xpose.msra.mxu1 %v2934_v62 }
 0xb09   : > { %4021 = vmatpush3.bf16.xpose.msra.mxu0 %v2887_v6  ;;  %4022 = vmatprep.mubr.msk.bf16.mxu0 %vm4259_vm1, %v4258_v15 }
 0xb0a   : > { %4028 = vmatprep.mubr.msk.bf16.mxu1 %vm4259_vm1, %v4258_v15  ;;  %4032 = vmatprep.subr.bf16.mxu0 %v4258_v15 }
 0xb0b   : > { %4038 = vmatprep.subr.bf16.mxu1 %v4258_v15 }
 0xb0f   : > { %4029 = vmatmul.mubr.msk.bf16.vlgmr.msra.gmra.mrb[116].mxu1 %vm434_vm2, %v2784_v18 }
 0xb10   : > { %4023 = vmatmul.mubr.msk.bf16.vlgmr.msra.gmra.mrb[92].mxu0 %vm434_vm2, %v2783_v19  ;;  %4039 = vmatpush3.bf16.msra.mxu1 %v3070_v22 }
 0xb11   : > { %4033 = vmatpush3.bf16.msra.mxu0 %v3069_v23  ;;  %4034 = vmatprep.mubr.msk.bf16.mxu0 %vm4259_vm1, %v4258_v15 }
 0xb12   : > { %4044 = vmatprep.subr.bf16.mxu0 %v4258_v15  ;;  %4040 = vmatprep.mubr.msk.bf16.mxu1 %vm4259_vm1, %v4258_v15 }
 0xb13   : > { %4050 = vmatprep.subr.bf16.mxu1 %v4258_v15 }
 0xbda   : > { %v2876_v4 = vpop.f32.mrb[112].mxu1 }
 0xbdb   : > { %v2829_v48 = vpop.f32.mrb[88].mxu0  ;;  %v4018_v56 = vpop.f32.mrb[113].mxu1  ;;  %v2983_v59 = vsel %vm200_vm0, %v2876_v4, -inf }
 0xbdc   : > { %v4012_v57 = vpop.f32.mrb[89].mxu0  ;;  %v2977_v44 = vsel %vm200_vm0, %v2829_v48, -inf  ;;  %v2879_v43 = vpop.f32.mrb[114].mxu1 }
 0xbdd   : > { %2978 = vmax.xlane.f32.xlu0 %v2977_v44  ;;  %v2832_v45 = vpop.f32.mrb[90].mxu0  ;;  %v4019_v46 = vpop.f32.mrb[115].mxu1  ;;  %v2986_v37 = vsel %vm200_vm0, %v2879_v43, -inf }
 0xbde   : > { %v2980_v47 = vsel %vm200_vm0, %v2832_v45, -inf  ;;  %v4013_v58 = vpop.f32.mrb[91].mxu0 }
 0xbdf   : > { %2981 = vmax.xlane.f32.xlu1 %v2980_v47 }
 0xbe1   : > { %2984 = vmax.xlane.f32.xlu0 %v2983_v59 }
 0xbe2   : > { %v2970_v52 = vpop.f32.mrb[116].mxu1 }
 0xbe3   : > { %2987 = vmax.xlane.f32.xlu1 %v2986_v37  ;;  %v2923_v33 = vpop.f32.mrb[92].mxu0  ;;  %v4030_v34 = vpop.f32.mrb[117].mxu1  ;;  %v2995_v0 = vsel %vm200_vm0, %v2970_v52, -inf }
 0xbe4   : > { %v4024_v60 = vpop.f32.mrb[93].mxu0  ;;  %v2989_v61 = vsel %vm200_vm0, %v2923_v33, -inf  ;;  %v2973_v42 = vpop.f32.mrb[118].mxu1 }
 0xbe5   : > { %2990 = vmax.xlane.f32.xlu0 %v2989_v61  ;;  %v2926_v53 = vpop.f32.mrb[94].mxu0  ;;  %v4031_v51 = vpop.f32.mrb[119].mxu1  ;;  %v2998_v1 = vsel %vm200_vm0, %v2973_v42, -inf }
 0xbe6   : > { %v2992_v55 = vsel %vm200_vm0, %v2926_v53, -inf  ;;  %v4025_v63 = vpop.f32.mrb[95].mxu0 }
 0xbe7   : > { %2993 = vmax.xlane.f32.xlu1 %v2992_v55 }
 0xbe9   : > { %2996 = vmax.xlane.f32.xlu0 %v2995_v0 }
 0xbeb   : > { %2999 = vmax.xlane.f32.xlu1 %v2998_v1 }
 0xc6a   : > { %v2979_v7 = vpop.xlane.xlu0 %2978 }
 0xc6b   : > { %v3001_v8 = vsub.f32 %v2829_v48, %v2979_v7 }
 0xc6c   : > { %v2982_v11 = vpop.xlane.xlu1 %2981 }
 0xc6d   : > { %v3009_v12 = vmul.f32 1.442695, %v3001_v8  ;;  %v3002_v14 = vsub.f32 %v2832_v45, %v2982_v11 }
 0xc6e   : > { %v2985_v16 = vpop.xlane.xlu0 %2984 }
 0xc6f   : > { %4218 = vpow2.f32 %v3009_v12  ;;  %v3011_v10 = vmul.f32 1.442695, %v3002_v14  ;;  %v3003_v17 = vsub.f32 %v2876_v4, %v2985_v16 }
 0xc70   : > { %v2988_v18 = vpop.xlane.xlu1 %2987 }
 0xc71   : > { %4220 = vpow2.f32 %v3011_v10  ;;  %v3013_v13 = vmul.f32 1.442695, %v3003_v17  ;;  %v3004_v19 = vsub.f32 %v2879_v43, %v2988_v18  ;;  %v4121_v18 = vld [vmem:[%s4806_s2 + $0x18] sm:$0x3f]  }
 0xc72   : > { %v2991_v20 = vpop.xlane.xlu0 %2990  ;;  %v3274_v24 = vsel %vm1615_vm3, %v4121_v18, 0 }
 0xc73   : > { %4222 = vpow2.f32 %v3013_v13  ;;  %v3015_v5 = vmul.f32 1.442695, %v3004_v19  ;;  %v3005_v21 = vsub.f32 %v2923_v33, %v2991_v20 }
 0xc74   : > { %v2994_v22 = vpop.xlane.xlu1 %2993 }
 0xc75   : > { %4224 = vpow2.f32 %v3015_v5  ;;  %v3017_v9 = vmul.f32 1.442695, %v3005_v21  ;;  %v3006_v23 = vsub.f32 %v2926_v53, %v2994_v22 }
 0xc76   : > { %v2997_v26 = vpop.xlane.xlu0 %2996 }
 0xc77   : > { %4226 = vpow2.f32 %v3017_v9  ;;  %v3019_v27 = vmul.f32 1.442695, %v3006_v23  ;;  %v3007_v28 = vsub.f32 %v2970_v52, %v2997_v26 }
 0xc78   : > { %v3000_v29 = vpop.xlane.xlu1 %2999 }
 0xc79   : > { %v4219_v30 = vpop.eup %4218  ;;  %4228 = vpow2.f32 %v3019_v27  ;;  %v3021_v31 = vmul.f32 1.442695, %v3007_v28  ;;  %v3008_v32 = vsub.f32 %v2973_v42, %v3000_v29 }
 0xc7a   : > { %v3025_v50 = vsel %vm200_vm0, %v4219_v30, 0.0 }
 0xc7b   : > { %v4221_v39 = vpop.eup %4220  ;;  %4230 = vpow2.f32 %v3021_v31  ;;  %v3023_v38 = vmul.f32 1.442695, %v3008_v32  ;;  %3026 = vadd.xlane.f32.xlu0 %v3025_v50 }
 0xc7c   : > { %v3028_v40 = vsel %vm200_vm0, %v4221_v39, 0.0 }
 0xc7d   : > { %v4223_v41 = vpop.eup %4222  ;;  %4232 = vpow2.f32 %v3023_v38  ;;  %3029 = vadd.xlane.f32.xlu1 %v3028_v40 }
 0xc7e   : > { %v3031_v54 = vsel %vm200_vm0, %v4223_v41, 0.0 }
 0xc7f   : > { %v4225_v3 = vpop.eup %4224  ;;  %3032 = vadd.xlane.f32.xlu0 %v3031_v54 }
 0xc80   : > { %v3034_v62 = vsel %vm200_vm0, %v4225_v3, 0.0 }
 0xc81   : > { %v4227_v6 = vpop.eup %4226  ;;  %3035 = vadd.xlane.f32.xlu1 %v3034_v62 }
 0xc82   : > { %v3037_v4 = vsel %vm200_vm0, %v4227_v6, 0.0 }
 0xc83   : > { %v4229_v48 = vpop.eup %4228  ;;  %3038 = vadd.xlane.f32.xlu0 %v3037_v4 }
 0xc84   : > { %v3040_v56 = vsel %vm200_vm0, %v4229_v48, 0.0 }
 0xc85   : > { %v4231_v57 = vpop.eup %4230  ;;  %3041 = vadd.xlane.f32.xlu1 %v3040_v56 }
 0xc86   : > { %v3043_v44 = vsel %vm200_vm0, %v4231_v57, 0.0 }
 0xc87   : > { %v4233_v43 = vpop.eup %4232  ;;  %3044 = vadd.xlane.f32.xlu0 %v3043_v44 }
 0xc88   : > { %v3046_v45 = vsel %vm200_vm0, %v4233_v43, 0.0 }
 0xc89   : > { %3047 = vadd.xlane.f32.xlu1 %v3046_v45 }
 0xd08   : > { %v3027_v46 = vpop.xlane.xlu0 %3026 }
 0xd09   : > { %4234 = vrcp.f32 %v3027_v46 }
 0xd0a   : > { %v3030_v47 = vpop.xlane.xlu1 %3029 }
 0xd0b   : > { %4236 = vrcp.f32 %v3030_v47 }
 0xd0c   : > { %v3033_v58 = vpop.xlane.xlu0 %3032 }
 0xd0d   : > { %4238 = vrcp.f32 %v3033_v58 }
 0xd0e   : > { %v3036_v59 = vpop.xlane.xlu1 %3035 }
 0xd0f   : > { %4240 = vrcp.f32 %v3036_v59 }
 0xd10   : > { %v3039_v37 = vpop.xlane.xlu0 %3038 }
 0xd11   : > { %4242 = vrcp.f32 %v3039_v37 }
 0xd12   : > { %v3042_v52 = vpop.xlane.xlu1 %3041 }
 0xd13   : > { %v4235_v33 = vpop.eup %4234  ;;  %4244 = vrcp.f32 %v3042_v52 }
 0xd14   : > { %v3045_v34 = vpop.xlane.xlu0 %3044  ;;  %v3057_v61 = vmul.f32 %v4235_v33, %v4219_v30 }
 0xd15   : > { %v4237_v60 = vpop.eup %4236  ;;  %4246 = vrcp.f32 %v3045_v34 }
 0xd16   : > { %v3058_v42 = vmul.f32 %v4237_v60, %v4221_v39  ;;  %v3048_v53 = vpop.xlane.xlu1 %3047 }
 0xd17   : > { %v4239_v51 = vpop.eup %4238  ;;  %4248 = vrcp.f32 %v3048_v53 }
 0xd18   : > { %v3065_v55 = vpack.c.bf16 %v3058_v42, %v3057_v61  ;;  %v3059_v0 = vmul.f32 %v4239_v51, %v4223_v41 }
 0xd19   : > { %v4241_v63 = vpop.eup %4240 }
 0xd1a   : > { %v3060_v1 = vmul.f32 %v4241_v63, %v4225_v3  ;;  %4035 = vmatmul.mubr.msk.bf16.vlgmr.msra.gmra.mrb[96].mxu0 %vm200_vm0, %v3065_v55 }
 0xd1b   : > { %v4243_v7 = vpop.eup %4242  ;;  %4045 = vmatpush3.bf16.msra.mxu0 %v3071_v49  ;;  %4046 = vmatprep.mubr.msk.bf16.mxu0 %vm4259_vm1, %v4258_v15 }
 0xd1c   : > { %v3066_v8 = vpack.c.bf16 %v3060_v1, %v3059_v0  ;;  %v3061_v12 = vmul.f32 %v4243_v7, %v4227_v6  ;;  %4095 = vmatprep.subr.msk.bf16.mxu0 %vm1615_vm3, %v4121_v18 }
 0xd1d   : > { %v4245_v11 = vpop.eup %4244 }
 0xd1e   : > { %v3062_v14 = vmul.f32 %v4245_v11, %v4229_v48  ;;  %4041 = vmatmul.mubr.msk.bf16.vlgmr.msra.gmra.mrb[120].mxu1 %vm200_vm0, %v3066_v8 }
 0xd1f   : > { %v4247_v16 = vpop.eup %4246  ;;  %4051 = vmatpush3.bf16.msra.mxu1 %v3072_v2  ;;  %4052 = vmatprep.mubr.msk.bf16.mxu1 %vm4259_vm1, %v4258_v15 }
 0xd20   : > { %v3067_v10 = vpack.c.bf16 %v3062_v14, %v3061_v12  ;;  %v3063_v36 = vmul.f32 %v4247_v16, %v4231_v57 }
 0xd21   : > { %v4249_v25 = vpop.eup %4248 }
 0xd22   : > { %v3064_v49 = vmul.f32 %v4249_v25, %v4233_v43  ;;  %4047 = vmatmul.mubr.msk.bf16.vlgmr.msra.gmra.mrb[100].mxu0 %vm200_vm0, %v3067_v10 }
 0xd23   : > { %4057 = vmatpush3.bf16.msra.mxu0 %v3274_v24 }
 0xd24   : > { %v3068_v17 = vpack.c.bf16 %v3064_v49, %v3063_v36 }
 0xd26   : > { %4053 = vmatmul.mubr.msk.bf16.vlgmr.msra.gmra.mrb[124].mxu1 %vm200_vm0, %v3068_v17 }
 0xded   : > { %v3110_v35 = vpop.f32.mrb[96].mxu0 }
 0xdee   : > { %v4036_v15 = vpop.f32.mrb[97].mxu0 }
 0xdef   : > { %v3113_v2 = vpop.f32.mrb[98].mxu0 }
 0xdf0   : > { %v3249_v13 = vpack.c.bf16 %v3113_v2, %v3110_v35  ;;  %v4037_v19 = vpop.f32.mrb[99].mxu0 }
 0xdf1   : > { %v3154_v20 = vpop.f32.mrb[120].mxu1 }
 0xdf2   : > { %v4042_v5 = vpop.f32.mrb[121].mxu1  ;;  %4058 = vmatprep.mubr.msk.bf16.mxu0 %vm434_vm2, %v3249_v13 }
 0xdf3   : > { %v3157_v21 = vpop.f32.mrb[122].mxu1 }
 0xdf4   : > { %v3250_v22 = vpack.c.bf16 %v3157_v21, %v3154_v20  ;;  %v4043_v9 = vpop.f32.mrb[123].mxu1 }
 0xdf5   : > { %v3198_v23 = vpop.f32.mrb[100].mxu0 }
 0xdf6   : > { %v4048_v26 = vpop.f32.mrb[101].mxu0  ;;  %4059 = vmatmul.mubr.msk.bf16.vlgmr.msra.gmra.mrb[52].mxu0 %vm434_vm2, %v3250_v22 }
 0xdf7   : > { %v3201_v27 = vpop.f32.mrb[102].mxu0 }
 0xdf8   : > { %v3251_v28 = vpack.c.bf16 %v3201_v27, %v3198_v23  ;;  %v4049_v29 = vpop.f32.mrb[103].mxu0 }
 0xdf9   : > { %v3242_v30 = vpop.f32.mrb[124].mxu1 }
 0xdfa   : > { %v4054_v31 = vpop.f32.mrb[125].mxu1  ;;  %4062 = vmatprep.mubr.msk.bf16.mxu0 %vm434_vm2, %v3251_v28 }
 0xdfb   : > { %v3245_v32 = vpop.f32.mrb[126].mxu1 }
 0xdfc   : > { %v3252_v50 = vpack.c.bf16 %v3245_v32, %v3242_v30  ;;  %v4055_v39 = vpop.f32.mrb[127].mxu1 }
 0xdfe   : > { %4063 = vmatmul.mubr.msk.bf16.gmra.mrb[56].mxu0 %vm434_vm2, %v3252_v50 }
 0xec9   : > { %v4060_v38 = vpop.f32.mrb[52].mxu0 }
 0xeca   : > { %v3310_v40 = vpop.f32.mrb[53].mxu0  ;;  %3351 = vst.msk [vmem:[%s177_s29 + $0x10] sm:$0xff] %vm200_vm0, %v4060_v38 }
 0xecb   : > { %3349 = vst.msk [vmem:[%s177_s29] sm:$0xff] %vm200_vm0, %v3310_v40  ;;  %v4061_v41 = vpop.f32.mrb[54].mxu0 }
 0xecc   : > { %v3313_v54 = vpop.f32.mrb[55].mxu0  ;;  %3352 = vst.msk [vmem:[%s177_s29 + $0x18] sm:$0xff] %vm200_vm0, %v4061_v41 }
 0xecd   : > { %3350 = vst.msk [vmem:[%s177_s29 + $0x8] sm:$0xff] %vm200_vm0, %v3313_v54 }
 0xed1   : > { %v4064_v3 = vpop.f32.mrb[56].mxu0 }
 0xed2   : > { %v3326_v62 = vpop.f32.mrb[57].mxu0  ;;  %3355 = vst.msk [vmem:[%s177_s29 + $0x30] sm:$0xff] %vm200_vm0, %v4064_v3 }
 0xed3   : > { %3353 = vst.msk [vmem:[%s177_s29 + $0x20] sm:$0xff] %vm200_vm0, %v3326_v62  ;;  %v4065_v6 = vpop.f32.mrb[58].mxu0 }
 0xed4   : > { %v3329_v4 = vpop.f32.mrb[59].mxu0  ;;  %3356 = vst.msk [vmem:[%s177_s29 + $0x38] sm:$0xff] %vm200_vm0, %v4065_v6 }
 0xed5   : > { %3354 = vst.msk [vmem:[%s177_s29 + $0x28] sm:$0xff] %vm200_vm0, %v3329_v4 }
 0xed6 PF: > { %s13_s12 = sadd.s32 1, %s4256_s12  }
 0xed7   : > { %p10_p4 = scmp.ge.s32.totalorder %s13_s12, 4  }
 0xed9   :  { %12 = sbr.rel (!%p10_p4) target bundleno = 1 (0x1), region = 76 }

</bundles_post_ra>
